<compile_context>
chip_gen: v7x
topology: tpu7x:2x2x1
jax: 0.10.0
libtpu: 0.0.40
codegen_flags: <defaults>
</compile_context>

<pallas_src>
import functools

import jax
import jax.numpy as jnp
from jax.experimental import pallas as pl
from jax.experimental.pallas import tpu as pltpu

LAYER_DIMS = (512, 256, 128, 64, 9)
LANE = 128
_MIB = 1024 * 1024


def _round_up(n, m):
    return ((n + m - 1) // m) * m


def _choose_tile_m(batch):
    """Row-tile heuristic:
       * 512 rows/tile for large batches (grid-step overhead amortization, 256-row MXU fill),
       * >=2 tiles whenever batch allows (v7x has 2 TensorCores sharing the batch axis),
       * tiny batches collapse to one small 16-aligned tile (16 keeps bf16 tiles legal)."""
    if batch >= 1024:
        return 512
    if batch > 256:
        return _round_up(pl.cdiv(batch, 2), 128)
    return max(16, _round_up(batch, 16))


def mlp_kernel(x_ref, *refs, precision=None):
    """refs = (w1, b1, ..., w5, b5, o_ref). Processes one (TM, in_features) row tile."""
    o_ref = refs[-1]
    wb_refs = refs[:-1]
    n_layers = len(wb_refs) // 2
    compute_dtype = wb_refs[0].dtype

    h = x_ref[...]
    if h.dtype != compute_dtype:
        h = h.astype(compute_dtype)          # only needed when x wasn't pre-cast

    for i in range(n_layers):
        w_ref = wb_refs[2 * i]
        b_ref = wb_refs[2 * i + 1]
        acc = jnp.dot(h, w_ref[...], preferred_element_type=jnp.float32,
                      precision=precision)   # f32 accumulation on the MXU
        y = acc + b_ref[...]                 # bias add in f32 (VPU)
        if i < n_layers - 1:
            y = jnp.maximum(y, 0.0)          # ReLU in f32; Dropout == identity (eval)
            h = y.astype(compute_dtype)      # single cast per layer for the next matmul
        else:
            o_ref[...] = y.astype(o_ref.dtype)


def multi_classifier_forward(
    x,
    params,
    *,
    tile_m=None,
    weight_dtype=jnp.bfloat16,     # bf16 weights/activations by default (f32 accumulation)
    out_dtype=jnp.float32,         # jnp.bfloat16 halves the padded-logits HBM writeback
    precision=None,                # pass jax.lax.Precision.HIGHEST for a strict-f32 path
    single_buffer_weights=True,    # constant-index weight blocks don't need 2 buffers
):
    """x: [B, in_features]. params: list of (W[in, out], b[1, out]) float32."""
    B, in_features = x.shape
    n_classes = params[-1][0].shape[1]

    # --- pad narrow layer widths (64, 9) to 128 lanes -> lane-dense (unmasked) stores ---
    padded_params = []
    prev_pad = 0
    for w, b in params:
        out_pad = (-w.shape[1]) % LANE
        w_p = jnp.pad(w, ((0, prev_pad), (0, out_pad)))   # zero rows/cols: no effect
        b_p = jnp.pad(b, ((0, 0), (0, out_pad)))
        if weight_dtype is not None:
            w_p = w_p.astype(weight_dtype)                # biases stay f32
        padded_params.append((w_p, b_p))
        prev_pad = out_pad
    out_dim_padded = padded_params[-1][0].shape[1]
    compute_dtype = padded_params[0][0].dtype

    # --- cast x once in the wrapper: halves the dominant HBM read (esp. v5e); identical
    #     rounding to the in-kernel cast that the matmul would do anyway ---
    if jnp.dtype(compute_dtype).itemsize < jnp.dtype(x.dtype).itemsize:
        x = x.astype(compute_dtype)

    # --- batch tiling ---
    if tile_m is None:
        tile_m = _choose_tile_m(B)
    n_tiles = pl.cdiv(B, tile_m)
    b_padded = n_tiles * tile_m
    if b_padded != B:
        x = jnp.pad(x, ((0, b_padded - B), (0, 0)))

    # --- cost estimate: scheduling hint for the surrounding XLA program ---
    dims = [in_features] + [w.shape[1] for w, _ in padded_params]
    flops = 2 * b_padded * sum(a * c for a, c in zip(dims[:-1], dims[1:]))
    param_bytes = sum(w.size * w.dtype.itemsize + b.size * b.dtype.itemsize
                      for w, b in padded_params)
    bytes_accessed = (x.size * x.dtype.itemsize + param_bytes
                      + b_padded * out_dim_padded * jnp.dtype(out_dtype).itemsize)
    cost = pl.CostEstimate(flops=flops, transcendentals=0, bytes_accessed=bytes_accessed)

    # --- right-sized VMEM limit (weights counted double-buffered to stay safe either way;
    #     capped at v7x's 64 MiB physical VMEM) ---
    act_bytes = tile_m * sum(dims[1:]) * 4
    io_bytes = (2 * tile_m * in_features * x.dtype.itemsize
                + 2 * tile_m * out_dim_padded * jnp.dtype(out_dtype).itemsize)
    needed = io_bytes + 2 * param_bytes + act_bytes
    vmem_limit = int(min(64 * _MIB, max(16 * _MIB, 2 * needed)))

    kernel = functools.partial(mlp_kernel, precision=precision)

    def run(use_single_buffer):
        wspec_kwargs = {}
        if use_single_buffer and hasattr(pl, "Buffered"):
            wspec_kwargs = dict(pipeline_mode=pl.Buffered(1))
        in_specs = [pl.BlockSpec((tile_m, in_features), lambda i: (i, 0))]
        flat_args = [x]
        for w, b in padded_params:
            in_specs.append(pl.BlockSpec(w.shape, lambda i: (0, 0), **wspec_kwargs))
            in_specs.append(pl.BlockSpec(b.shape, lambda i: (0, 0), **wspec_kwargs))
            flat_args.extend([w, b])
        out_spec = pl.BlockSpec((tile_m, out_dim_padded), lambda i: (i, 0))
        return pl.pallas_call(
            kernel,
            out_shape=jax.ShapeDtypeStruct((b_padded, out_dim_padded), out_dtype),
            grid=(n_tiles,),
            in_specs=in_specs,
            out_specs=out_spec,
            compiler_params=pltpu.CompilerParams(
                dimension_semantics=("parallel",),
                vmem_limit_bytes=vmem_limit,
            ),
            cost_estimate=cost,
        )(*flat_args)

    if single_buffer_weights:
        try:
            out = run(True)
        except Exception:
            # pipeline_mode=pl.Buffered(1) unsupported by this JAX build; constant
            # index_maps already avoid re-DMA, only the VMEM footprint grows.
            out = run(False)
    else:
        out = run(False)

    return out[:B, :n_classes]


def init_params(key, in_features):
    """Deterministic init mirroring nn.Linear shapes (uniform +/- 1/sqrt(fan_in))."""
    params = []
    fan_in = in_features
    for out_dim in LAYER_DIMS:
        key, kw, kb = jax.random.split(key, 3)
        bound = 1.0 / jnp.sqrt(float(fan_in))
        w = jax.random.uniform(kw, (fan_in, out_dim), jnp.float32, -bound, bound)
        b = jax.random.uniform(kb, (1, out_dim), jnp.float32, -bound, bound)
        params.append((w, b))
        fan_in = out_dim
    return params


def reference_forward(x, params, precision=None):
    h = x
    for i, (w, b) in enumerate(params):
        h = jnp.dot(h, w, precision=precision) + b
        if i < len(params) - 1:
            h = jnp.maximum(h, 0.0)
    return h


if __name__ == "__main__":
    key = jax.random.PRNGKey(0)
    key, kx, kp = jax.random.split(key, 3)

    batch = 8
    in_features = 32

    x = jax.random.normal(kx, (batch, in_features), jnp.float32)
    params = init_params(kp, in_features)
    ref = reference_forward(x, params)

    # Default path: bf16 weights/activations, f32 accumulation, f32 logits.
    out = jax.block_until_ready(multi_classifier_forward(x, params))
    assert out.shape == (batch, 9), out.shape
    assert jnp.allclose(out, ref, atol=5e-2, rtol=5e-2), "bf16 default path mismatch"

    # f32 weights: same-precision check vs the pure-JAX reference.
    out_f32 = jax.block_until_ready(
        multi_classifier_forward(x, params, weight_dtype=jnp.float32))
    assert out_f32.shape == (batch, 9), out_f32.shape
    assert jnp.allclose(out_f32, ref, atol=1e-4, rtol=1e-4), "f32 path mismatch"

    # bf16 logits: halves the padded-output HBM writeback.
    out_bf = jax.block_until_ready(
        multi_classifier_forward(x, params, out_dtype=jnp.bfloat16))
    assert out_bf.shape == (batch, 9) and out_bf.dtype == jnp.bfloat16
    assert jnp.allclose(out_bf.astype(jnp.float32), ref, atol=1e-1, rtol=1e-1), \
        "bf16-logits path mismatch"

    print("KERNEL_OK")
</pallas_src>

<mosaic_0001>
module attributes {stable_mosaic.version = 11 : i64} {
  func.func @mlp_kernel(%arg0: i32, %arg1: memref<16x32xbf16, #tpu.memory_space<vmem>>, %arg2: memref<32x512xbf16, #tpu.memory_space<vmem>>, %arg3: memref<1x512xf32, #tpu.memory_space<vmem>>, %arg4: memref<512x256xbf16, #tpu.memory_space<vmem>>, %arg5: memref<1x256xf32, #tpu.memory_space<vmem>>, %arg6: memref<256x128xbf16, #tpu.memory_space<vmem>>, %arg7: memref<1x128xf32, #tpu.memory_space<vmem>>, %arg8: memref<128x128xbf16, #tpu.memory_space<vmem>>, %arg9: memref<1x128xf32, #tpu.memory_space<vmem>>, %arg10: memref<128x128xbf16, #tpu.memory_space<vmem>>, %arg11: memref<1x128xf32, #tpu.memory_space<vmem>>, %arg12: memref<16x128xf32, #tpu.memory_space<vmem>>) attributes {dimension_semantics = [#tpu.dimension_semantics<parallel>], iteration_bounds = array<i64: 1>, scalar_prefetch = 0 : i64, scratch_operands = 0 : i64, tpu.core_type = #tpu.core_type<tc>, window_params = [{transform_indices = @transform_0, window_bounds = array<i64: 16, 32>}, {pipeline_mode = #tpu.pipeline_mode<synchronous>, transform_indices = @transform_1, window_bounds = array<i64: 32, 512>}, {pipeline_mode = #tpu.pipeline_mode<synchronous>, transform_indices = @transform_2, window_bounds = array<i64: 1, 512>}, {pipeline_mode = #tpu.pipeline_mode<synchronous>, transform_indices = @transform_3, window_bounds = array<i64: 512, 256>}, {pipeline_mode = #tpu.pipeline_mode<synchronous>, transform_indices = @transform_4, window_bounds = array<i64: 1, 256>}, {pipeline_mode = #tpu.pipeline_mode<synchronous>, transform_indices = @transform_5, window_bounds = array<i64: 256, 128>}, {pipeline_mode = #tpu.pipeline_mode<synchronous>, transform_indices = @transform_6, window_bounds = array<i64: 1, 128>}, {pipeline_mode = #tpu.pipeline_mode<synchronous>, transform_indices = @transform_7, window_bounds = array<i64: 128, 128>}, {pipeline_mode = #tpu.pipeline_mode<synchronous>, transform_indices = @transform_8, window_bounds = array<i64: 1, 128>}, {pipeline_mode = #tpu.pipeline_mode<synchronous>, transform_indices = @transform_9, window_bounds = array<i64: 128, 128>}, {pipeline_mode = #tpu.pipeline_mode<synchronous>, transform_indices = @transform_10, window_bounds = array<i64: 1, 128>}, {transform_indices = @transform_11, window_bounds = array<i64: 16, 128>}]} {
    %c0 = arith.constant 0 : index
    %c0_0 = arith.constant 0 : index
    %0 = vector.load %arg1[%c0, %c0_0] : memref<16x32xbf16, #tpu.memory_space<vmem>>, vector<16x32xbf16>
    %c0_1 = arith.constant 0 : index
    %c0_2 = arith.constant 0 : index
    %1 = vector.load %arg2[%c0_1, %c0_2] : memref<32x512xbf16, #tpu.memory_space<vmem>>, vector<32x512xbf16>
    %cst = arith.constant dense<0.000000e+00> : vector<16x512xf32>
    %2 = tpu.matmul %0, %1, %cst {dimension_numbers = #tpu.dot_dimension_numbers<[1], [0], [0], [1], [0, 0, 1, 1], [], []>} : vector<16x32xbf16>, vector<32x512xbf16>, vector<16x512xf32> -> vector<16x512xf32>
    %c0_3 = arith.constant 0 : index
    %c0_4 = arith.constant 0 : index
    %3 = vector.load %arg3[%c0_3, %c0_4] : memref<1x512xf32, #tpu.memory_space<vmem>>, vector<1x512xf32>
    %4 = vector.broadcast %3 : vector<1x512xf32> to vector<16x512xf32>
    %5 = arith.addf %2, %4 : vector<16x512xf32>
    %cst_5 = arith.constant 0.000000e+00 : f32
    %6 = vector.broadcast %cst_5 : f32 to vector<16x512xf32>
    %7 = arith.maximumf %5, %6 : vector<16x512xf32>
    %8 = arith.truncf %7 : vector<16x512xf32> to vector<16x512xbf16>
    %c0_6 = arith.constant 0 : index
    %c0_7 = arith.constant 0 : index
    %9 = vector.load %arg4[%c0_6, %c0_7] : memref<512x256xbf16, #tpu.memory_space<vmem>>, vector<512x256xbf16>
    %cst_8 = arith.constant dense<0.000000e+00> : vector<16x256xf32>
    %10 = tpu.matmul %8, %9, %cst_8 {dimension_numbers = #tpu.dot_dimension_numbers<[1], [0], [0], [1], [0, 0, 1, 1], [], []>} : vector<16x512xbf16>, vector<512x256xbf16>, vector<16x256xf32> -> vector<16x256xf32>
    %c0_9 = arith.constant 0 : index
    %c0_10 = arith.constant 0 : index
    %11 = vector.load %arg5[%c0_9, %c0_10] : memref<1x256xf32, #tpu.memory_space<vmem>>, vector<1x256xf32>
    %12 = vector.broadcast %11 : vector<1x256xf32> to vector<16x256xf32>
    %13 = arith.addf %10, %12 : vector<16x256xf32>
    %cst_11 = arith.constant 0.000000e+00 : f32
    %14 = vector.broadcast %cst_11 : f32 to vector<16x256xf32>
    %15 = arith.maximumf %13, %14 : vector<16x256xf32>
    %16 = arith.truncf %15 : vector<16x256xf32> to vector<16x256xbf16>
    %c0_12 = arith.constant 0 : index
    %c0_13 = arith.constant 0 : index
    %17 = vector.load %arg6[%c0_12, %c0_13] : memref<256x128xbf16, #tpu.memory_space<vmem>>, vector<256x128xbf16>
    %cst_14 = arith.constant dense<0.000000e+00> : vector<16x128xf32>
    %18 = tpu.matmul %16, %17, %cst_14 {dimension_numbers = #tpu.dot_dimension_numbers<[1], [0], [0], [1], [0, 0, 1, 1], [], []>} : vector<16x256xbf16>, vector<256x128xbf16>, vector<16x128xf32> -> vector<16x128xf32>
    %c0_15 = arith.constant 0 : index
    %c0_16 = arith.constant 0 : index
    %19 = vector.load %arg7[%c0_15, %c0_16] : memref<1x128xf32, #tpu.memory_space<vmem>>, vector<1x128xf32>
    %20 = vector.broadcast %19 : vector<1x128xf32> to vector<16x128xf32>
    %21 = arith.addf %18, %20 : vector<16x128xf32>
    %cst_17 = arith.constant 0.000000e+00 : f32
    %22 = vector.broadcast %cst_17 : f32 to vector<16x128xf32>
    %23 = arith.maximumf %21, %22 : vector<16x128xf32>
    %24 = arith.truncf %23 : vector<16x128xf32> to vector<16x128xbf16>
    %c0_18 = arith.constant 0 : index
    %c0_19 = arith.constant 0 : index
    %25 = vector.load %arg8[%c0_18, %c0_19] : memref<128x128xbf16, #tpu.memory_space<vmem>>, vector<128x128xbf16>
    %cst_20 = arith.constant dense<0.000000e+00> : vector<16x128xf32>
    %26 = tpu.matmul %24, %25, %cst_20 {dimension_numbers = #tpu.dot_dimension_numbers<[1], [0], [0], [1], [0, 0, 1, 1], [], []>} : vector<16x128xbf16>, vector<128x128xbf16>, vector<16x128xf32> -> vector<16x128xf32>
    %c0_21 = arith.constant 0 : index
    %c0_22 = arith.constant 0 : index
    %27 = vector.load %arg9[%c0_21, %c0_22] : memref<1x128xf32, #tpu.memory_space<vmem>>, vector<1x128xf32>
    %28 = vector.broadcast %27 : vector<1x128xf32> to vector<16x128xf32>
    %29 = arith.addf %26, %28 : vector<16x128xf32>
    %cst_23 = arith.constant 0.000000e+00 : f32
    %30 = vector.broadcast %cst_23 : f32 to vector<16x128xf32>
    %31 = arith.maximumf %29, %30 : vector<16x128xf32>
    %32 = arith.truncf %31 : vector<16x128xf32> to vector<16x128xbf16>
    %c0_24 = arith.constant 0 : index
    %c0_25 = arith.constant 0 : index
    %33 = vector.load %arg10[%c0_24, %c0_25] : memref<128x128xbf16, #tpu.memory_space<vmem>>, vector<128x128xbf16>
    %cst_26 = arith.constant dense<0.000000e+00> : vector<16x128xf32>
    %34 = tpu.matmul %32, %33, %cst_26 {dimension_numbers = #tpu.dot_dimension_numbers<[1], [0], [0], [1], [0, 0, 1, 1], [], []>} : vector<16x128xbf16>, vector<128x128xbf16>, vector<16x128xf32> -> vector<16x128xf32>
    %c0_27 = arith.constant 0 : index
    %c0_28 = arith.constant 0 : index
    %35 = vector.load %arg11[%c0_27, %c0_28] : memref<1x128xf32, #tpu.memory_space<vmem>>, vector<1x128xf32>
    %36 = vector.broadcast %35 : vector<1x128xf32> to vector<16x128xf32>
    %37 = arith.addf %34, %36 : vector<16x128xf32>
    %c0_29 = arith.constant 0 : index
    %c0_30 = arith.constant 0 : index
    %38 = vector.load %arg12[%c0_29, %c0_30] : memref<16x128xf32, #tpu.memory_space<vmem>>, vector<16x128xf32>
    tpu.vector_store %arg12[%c0_29, %c0_30], %37 {strides = array<i32>} : memref<16x128xf32, #tpu.memory_space<vmem>>, vector<16x128xf32>,
    return
  }
  func.func @transform_0(%arg0: i32) -> (i32, i32) {
    %c0_i32 = arith.constant 0 : i32
    %c0_i32_0 = arith.constant 0 : i32
    return %arg0, %c0_i32 : i32, i32
  }
  func.func @transform_1(%arg0: i32) -> (i32, i32) {
    %c0_i32 = arith.constant 0 : i32
    %c0_i32_0 = arith.constant 0 : i32
    %c0_i32_1 = arith.constant 0 : i32
    return %c0_i32, %c0_i32_0 : i32, i32
  }
  func.func @transform_2(%arg0: i32) -> (i32, i32) {
    %c0_i32 = arith.constant 0 : i32
    %c0_i32_0 = arith.constant 0 : i32
    %c0_i32_1 = arith.constant 0 : i32
    return %c0_i32, %c0_i32_0 : i32, i32
  }
  func.func @transform_3(%arg0: i32) -> (i32, i32) {
    %c0_i32 = arith.constant 0 : i32
    %c0_i32_0 = arith.constant 0 : i32
    %c0_i32_1 = arith.constant 0 : i32
    return %c0_i32, %c0_i32_0 : i32, i32
  }
  func.func @transform_4(%arg0: i32) -> (i32, i32) {
    %c0_i32 = arith.constant 0 : i32
    %c0_i32_0 = arith.constant 0 : i32
    %c0_i32_1 = arith.constant 0 : i32
    return %c0_i32, %c0_i32_0 : i32, i32
  }
  func.func @transform_5(%arg0: i32) -> (i32, i32) {
    %c0_i32 = arith.constant 0 : i32
    %c0_i32_0 = arith.constant 0 : i32
    %c0_i32_1 = arith.constant 0 : i32
    return %c0_i32, %c0_i32_0 : i32, i32
  }
  func.func @transform_6(%arg0: i32) -> (i32, i32) {
    %c0_i32 = arith.constant 0 : i32
    %c0_i32_0 = arith.constant 0 : i32
    %c0_i32_1 = arith.constant 0 : i32
    return %c0_i32, %c0_i32_0 : i32, i32
  }
  func.func @transform_7(%arg0: i32) -> (i32, i32) {
    %c0_i32 = arith.constant 0 : i32
    %c0_i32_0 = arith.constant 0 : i32
    %c0_i32_1 = arith.constant 0 : i32
    return %c0_i32, %c0_i32_0 : i32, i32
  }
  func.func @transform_8(%arg0: i32) -> (i32, i32) {
    %c0_i32 = arith.constant 0 : i32
    %c0_i32_0 = arith.constant 0 : i32
    %c0_i32_1 = arith.constant 0 : i32
    return %c0_i32, %c0_i32_0 : i32, i32
  }
  func.func @transform_9(%arg0: i32) -> (i32, i32) {
    %c0_i32 = arith.constant 0 : i32
    %c0_i32_0 = arith.constant 0 : i32
    %c0_i32_1 = arith.constant 0 : i32
    return %c0_i32, %c0_i32_0 : i32, i32
  }
  func.func @transform_10(%arg0: i32) -> (i32, i32) {
    %c0_i32 = arith.constant 0 : i32
    %c0_i32_0 = arith.constant 0 : i32
    %c0_i32_1 = arith.constant 0 : i32
    return %c0_i32, %c0_i32_0 : i32, i32
  }
  func.func @transform_11(%arg0: i32) -> (i32, i32) {
    %c0_i32 = arith.constant 0 : i32
    %c0_i32_0 = arith.constant 0 : i32
    return %arg0, %c0_i32 : i32, i32
  }
}

module attributes {stable_mosaic.version = 11 : i64} {
  func.func @mlp_kernel(%arg0: i32, %arg1: memref<16x32xbf16, #tpu.memory_space<vmem>>, %arg2: memref<32x512xbf16, #tpu.memory_space<vmem>>, %arg3: memref<1x512xf32, #tpu.memory_space<vmem>>, %arg4: memref<512x256xbf16, #tpu.memory_space<vmem>>, %arg5: memref<1x256xf32, #tpu.memory_space<vmem>>, %arg6: memref<256x128xbf16, #tpu.memory_space<vmem>>, %arg7: memref<1x128xf32, #tpu.memory_space<vmem>>, %arg8: memref<128x128xbf16, #tpu.memory_space<vmem>>, %arg9: memref<1x128xf32, #tpu.memory_space<vmem>>, %arg10: memref<128x128xbf16, #tpu.memory_space<vmem>>, %arg11: memref<1x128xf32, #tpu.memory_space<vmem>>, %arg12: memref<16x128xf32, #tpu.memory_space<vmem>>) attributes {dimension_semantics = [#tpu.dimension_semantics<parallel>], iteration_bounds = array<i64: 1>, scalar_prefetch = 0 : i64, scratch_operands = 0 : i64, tpu.core_type = #tpu.core_type<tc>, window_params = [{transform_indices = @transform_0, window_bounds = array<i64: 16, 32>}, {pipeline_mode = #tpu.pipeline_mode<synchronous>, transform_indices = @transform_1, window_bounds = array<i64: 32, 512>}, {pipeline_mode = #tpu.pipeline_mode<synchronous>, transform_indices = @transform_2, window_bounds = array<i64: 1, 512>}, {pipeline_mode = #tpu.pipeline_mode<synchronous>, transform_indices = @transform_3, window_bounds = array<i64: 512, 256>}, {pipeline_mode = #tpu.pipeline_mode<synchronous>, transform_indices = @transform_4, window_bounds = array<i64: 1, 256>}, {pipeline_mode = #tpu.pipeline_mode<synchronous>, transform_indices = @transform_5, window_bounds = array<i64: 256, 128>}, {pipeline_mode = #tpu.pipeline_mode<synchronous>, transform_indices = @transform_6, window_bounds = array<i64: 1, 128>}, {pipeline_mode = #tpu.pipeline_mode<synchronous>, transform_indices = @transform_7, window_bounds = array<i64: 128, 128>}, {pipeline_mode = #tpu.pipeline_mode<synchronous>, transform_indices = @transform_8, window_bounds = array<i64: 1, 128>}, {pipeline_mode = #tpu.pipeline_mode<synchronous>, transform_indices = @transform_9, window_bounds = array<i64: 128, 128>}, {pipeline_mode = #tpu.pipeline_mode<synchronous>, transform_indices = @transform_10, window_bounds = array<i64: 1, 128>}, {transform_indices = @transform_11, window_bounds = array<i64: 16, 128>}]} {
    %c0 = arith.constant 0 : index
    %c0_0 = arith.constant 0 : index
    %0 = vector.load %arg1[%c0, %c0_0] : memref<16x32xbf16, #tpu.memory_space<vmem>>, vector<16x32xbf16>
    %c0_1 = arith.constant 0 : index
    %c0_2 = arith.constant 0 : index
    %1 = vector.load %arg2[%c0_1, %c0_2] : memref<32x512xbf16, #tpu.memory_space<vmem>>, vector<32x512xbf16>
    %cst = arith.constant dense<0.000000e+00> : vector<16x512xf32>
    %2 = tpu.matmul %0, %1, %cst {dimension_numbers = #tpu.dot_dimension_numbers<[1], [0], [0], [1], [0, 0, 1, 1], [], []>} : vector<16x32xbf16>, vector<32x512xbf16>, vector<16x512xf32> -> vector<16x512xf32>
    %c0_3 = arith.constant 0 : index
    %c0_4 = arith.constant 0 : index
    %3 = vector.load %arg3[%c0_3, %c0_4] : memref<1x512xf32, #tpu.memory_space<vmem>>, vector<1x512xf32>
    %4 = vector.broadcast %3 : vector<1x512xf32> to vector<16x512xf32>
    %5 = arith.addf %2, %4 : vector<16x512xf32>
    %cst_5 = arith.constant 0.000000e+00 : f32
    %6 = vector.broadcast %cst_5 : f32 to vector<16x512xf32>
    %7 = arith.maximumf %5, %6 : vector<16x512xf32>
    %8 = arith.truncf %7 : vector<16x512xf32> to vector<16x512xbf16>
    %c0_6 = arith.constant 0 : index
    %c0_7 = arith.constant 0 : index
    %9 = vector.load %arg4[%c0_6, %c0_7] : memref<512x256xbf16, #tpu.memory_space<vmem>>, vector<512x256xbf16>
    %cst_8 = arith.constant dense<0.000000e+00> : vector<16x256xf32>
    %10 = tpu.matmul %8, %9, %cst_8 {dimension_numbers = #tpu.dot_dimension_numbers<[1], [0], [0], [1], [0, 0, 1, 1], [], []>} : vector<16x512xbf16>, vector<512x256xbf16>, vector<16x256xf32> -> vector<16x256xf32>
    %c0_9 = arith.constant 0 : index
    %c0_10 = arith.constant 0 : index
    %11 = vector.load %arg5[%c0_9, %c0_10] : memref<1x256xf32, #tpu.memory_space<vmem>>, vector<1x256xf32>
    %12 = vector.broadcast %11 : vector<1x256xf32> to vector<16x256xf32>
    %13 = arith.addf %10, %12 : vector<16x256xf32>
    %cst_11 = arith.constant 0.000000e+00 : f32
    %14 = vector.broadcast %cst_11 : f32 to vector<16x256xf32>
    %15 = arith.maximumf %13, %14 : vector<16x256xf32>
    %16 = arith.truncf %15 : vector<16x256xf32> to vector<16x256xbf16>
    %c0_12 = arith.constant 0 : index
    %c0_13 = arith.constant 0 : index
    %17 = vector.load %arg6[%c0_12, %c0_13] : memref<256x128xbf16, #tpu.memory_space<vmem>>, vector<256x128xbf16>
    %cst_14 = arith.constant dense<0.000000e+00> : vector<16x128xf32>
    %18 = tpu.matmul %16, %17, %cst_14 {dimension_numbers = #tpu.dot_dimension_numbers<[1], [0], [0], [1], [0, 0, 1, 1], [], []>} : vector<16x256xbf16>, vector<256x128xbf16>, vector<16x128xf32> -> vector<16x128xf32>
    %c0_15 = arith.constant 0 : index
    %c0_16 = arith.constant 0 : index
    %19 = vector.load %arg7[%c0_15, %c0_16] : memref<1x128xf32, #tpu.memory_space<vmem>>, vector<1x128xf32>
    %20 = vector.broadcast %19 : vector<1x128xf32> to vector<16x128xf32>
    %21 = arith.addf %18, %20 : vector<16x128xf32>
    %cst_17 = arith.constant 0.000000e+00 : f32
    %22 = vector.broadcast %cst_17 : f32 to vector<16x128xf32>
    %23 = arith.maximumf %21, %22 : vector<16x128xf32>
    %24 = arith.truncf %23 : vector<16x128xf32> to vector<16x128xbf16>
    %c0_18 = arith.constant 0 : index
    %c0_19 = arith.constant 0 : index
    %25 = vector.load %arg8[%c0_18, %c0_19] : memref<128x128xbf16, #tpu.memory_space<vmem>>, vector<128x128xbf16>
    %cst_20 = arith.constant dense<0.000000e+00> : vector<16x128xf32>
    %26 = tpu.matmul %24, %25, %cst_20 {dimension_numbers = #tpu.dot_dimension_numbers<[1], [0], [0], [1], [0, 0, 1, 1], [], []>} : vector<16x128xbf16>, vector<128x128xbf16>, vector<16x128xf32> -> vector<16x128xf32>
    %c0_21 = arith.constant 0 : index
    %c0_22 = arith.constant 0 : index
    %27 = vector.load %arg9[%c0_21, %c0_22] : memref<1x128xf32, #tpu.memory_space<vmem>>, vector<1x128xf32>
    %28 = vector.broadcast %27 : vector<1x128xf32> to vector<16x128xf32>
    %29 = arith.addf %26, %28 : vector<16x128xf32>
    %cst_23 = arith.constant 0.000000e+00 : f32
    %30 = vector.broadcast %cst_23 : f32 to vector<16x128xf32>
    %31 = arith.maximumf %29, %30 : vector<16x128xf32>
    %32 = arith.truncf %31 : vector<16x128xf32> to vector<16x128xbf16>
    %c0_24 = arith.constant 0 : index
    %c0_25 = arith.constant 0 : index
    %33 = vector.load %arg10[%c0_24, %c0_25] : memref<128x128xbf16, #tpu.memory_space<vmem>>, vector<128x128xbf16>
    %cst_26 = arith.constant dense<0.000000e+00> : vector<16x128xf32>
    %34 = tpu.matmul %32, %33, %cst_26 {dimension_numbers = #tpu.dot_dimension_numbers<[1], [0], [0], [1], [0, 0, 1, 1], [], []>} : vector<16x128xbf16>, vector<128x128xbf16>, vector<16x128xf32> -> vector<16x128xf32>
    %c0_27 = arith.constant 0 : index
    %c0_28 = arith.constant 0 : index
    %35 = vector.load %arg11[%c0_27, %c0_28] : memref<1x128xf32, #tpu.memory_space<vmem>>, vector<1x128xf32>
    %36 = vector.broadcast %35 : vector<1x128xf32> to vector<16x128xf32>
    %37 = arith.addf %34, %36 : vector<16x128xf32>
    %c0_29 = arith.constant 0 : index
    %c0_30 = arith.constant 0 : index
    %38 = vector.load %arg12[%c0_29, %c0_30] : memref<16x128xf32, #tpu.memory_space<vmem>>, vector<16x128xf32>
    tpu.vector_store %arg12[%c0_29, %c0_30], %37 {strides = array<i32>} : memref<16x128xf32, #tpu.memory_space<vmem>>, vector<16x128xf32>,
    return
  }
  func.func @transform_0(%arg0: i32) -> (i32, i32) {
    %c0_i32 = arith.constant 0 : i32
    %c0_i32_0 = arith.constant 0 : i32
    return %arg0, %c0_i32 : i32, i32
  }
  func.func @transform_1(%arg0: i32) -> (i32, i32) {
    %c0_i32 = arith.constant 0 : i32
    %c0_i32_0 = arith.constant 0 : i32
    %c0_i32_1 = arith.constant 0 : i32
    return %c0_i32, %c0_i32_0 : i32, i32
  }
  func.func @transform_2(%arg0: i32) -> (i32, i32) {
    %c0_i32 = arith.constant 0 : i32
    %c0_i32_0 = arith.constant 0 : i32
    %c0_i32_1 = arith.constant 0 : i32
    return %c0_i32, %c0_i32_0 : i32, i32
  }
  func.func @transform_3(%arg0: i32) -> (i32, i32) {
    %c0_i32 = arith.constant 0 : i32
    %c0_i32_0 = arith.constant 0 : i32
    %c0_i32_1 = arith.constant 0 : i32
    return %c0_i32, %c0_i32_0 : i32, i32
  }
  func.func @transform_4(%arg0: i32) -> (i32, i32) {
    %c0_i32 = arith.constant 0 : i32
    %c0_i32_0 = arith.constant 0 : i32
    %c0_i32_1 = arith.constant 0 : i32
    return %c0_i32, %c0_i32_0 : i32, i32
  }
  func.func @transform_5(%arg0: i32) -> (i32, i32) {
    %c0_i32 = arith.constant 0 : i32
    %c0_i32_0 = arith.constant 0 : i32
    %c0_i32_1 = arith.constant 0 : i32
    return %c0_i32, %c0_i32_0 : i32, i32
  }
  func.func @transform_6(%arg0: i32) -> (i32, i32) {
    %c0_i32 = arith.constant 0 : i32
    %c0_i32_0 = arith.constant 0 : i32
    %c0_i32_1 = arith.constant 0 : i32
    return %c0_i32, %c0_i32_0 : i32, i32
  }
  func.func @transform_7(%arg0: i32) -> (i32, i32) {
    %c0_i32 = arith.constant 0 : i32
    %c0_i32_0 = arith.constant 0 : i32
    %c0_i32_1 = arith.constant 0 : i32
    return %c0_i32, %c0_i32_0 : i32, i32
  }
  func.func @transform_8(%arg0: i32) -> (i32, i32) {
    %c0_i32 = arith.constant 0 : i32
    %c0_i32_0 = arith.constant 0 : i32
    %c0_i32_1 = arith.constant 0 : i32
    return %c0_i32, %c0_i32_0 : i32, i32
  }
  func.func @transform_9(%arg0: i32) -> (i32, i32) {
    %c0_i32 = arith.constant 0 : i32
    %c0_i32_0 = arith.constant 0 : i32
    %c0_i32_1 = arith.constant 0 : i32
    return %c0_i32, %c0_i32_0 : i32, i32
  }
  func.func @transform_10(%arg0: i32) -> (i32, i32) {
    %c0_i32 = arith.constant 0 : i32
    %c0_i32_0 = arith.constant 0 : i32
    %c0_i32_1 = arith.constant 0 : i32
    return %c0_i32, %c0_i32_0 : i32, i32
  }
  func.func @transform_11(%arg0: i32) -> (i32, i32) {
    %c0_i32 = arith.constant 0 : i32
    %c0_i32_0 = arith.constant 0 : i32
    return %arg0, %c0_i32 : i32, i32
  }
}

</mosaic_0001>

<bundles_post_ra>
// kernel: tpu_custom_call.1
= control target key start
LH: loop header
LB: loop body
LE: loop exit
PB: predicated region body
PF: predicated region fallthrough
CT: control target
= control target key end

     0   :  { %16 = vsyncpa [#allocation3], 0  ;;  %s1972_s0 = inlined_call_operand.hbm [shape: bf16[16,32], index: 0, kind: input, shape index: {}]   ;;  %s1973_s1 = inlined_call_operand.hbm [shape: bf16[32,512], index: 1, kind: input, shape index: {}]   ;;  %s1974_s2 = inlined_call_operand.vmem [shape: f32[1,512], index: 2, kind: input, shape index: {}]   ;;  %s1975_s3 = inlined_call_operand.hbm [shape: bf16[512,256], index: 3, kind: input, shape index: {}]   ;;  %s1976_s4 = inlined_call_operand.vmem [shape: f32[1,256], index: 4, kind: input, shape index: {}]   ;;  %s1977_s5 = inlined_call_operand.hbm [shape: bf16[256,128], index: 5, kind: input, shape index: {}]   ;;  %s1978_s6 = inlined_call_operand.vmem [shape: f32[1,128], index: 6, kind: input, shape index: {}]   ;;  %s1979_s7 = inlined_call_operand.hbm [shape: bf16[128,128], index: 7, kind: input, shape index: {}]   ;;  %s1980_s8 = inlined_call_operand.vmem [shape: f32[1,128], index: 8, kind: input, shape index: {}]   ;;  %s1981_s9 = inlined_call_operand.hbm [shape: bf16[128,128], index: 9, kind: input, shape index: {}]   ;;  %s1982_s10 = inlined_call_operand.vmem [shape: f32[1,128], index: 10, kind: input, shape index: {}]   ;;  %s1983_s11 = inlined_call_operand.hbm [shape: f32[16,128], index: 11, kind: output, shape index: {}]  }
   0x1   :  { %17 = vsyncpa [#allocation6], 0 }
   0x2   :  { %18 = vsyncpa [#allocation9], 0 }
   0x3   :  { %19 = vsyncpa [#allocation12], 0 }
   0x4   :  { %20 = vsyncpa [#allocation4], 0  ;;  %s1736_s17 = smov [#allocation5]   ;;  %s1572_s21 = scalar_lea.hbm %s1973_s1, 1024 }
   0x5   :  { %s38_s18 = sshll.u32 %s1736_s17, 4  ;;  %p1573_p0 = scmp.ne.s32.totalorder %s1973_s1, %s1572_s21  ;;  %s39_s18 = int_to_ptr.vmem [resolvable:$true] %s38_s18 }
   0x6   :  { %p1576_p1 = scmp.lt.u32.totalorder %s1572_s21, %s1973_s1 }
   0x8   :  { %p1578_p2 = pnand %p1576_p1, %p1573_p0 }
   0xa   :  { %1581 = shalt.err (!%p1578_p2)
}
   0xb   :  { %s1582_s26 = scalar_lea.vmem %s39_s18, 1024  ;;  %p1587_p4 = scmp.lt.s32.totalorder %s39_s18, %s39_s18 }
   0xc   :  { %p1583_p3 = scmp.ne.s32.totalorder %s39_s18, %s1582_s26  ;;  %p1588_p5 = scmp.lt.s32.totalorder %s1582_s26, %s1582_s26 }
   0xe   :  { %p1589_p6 = por %p1588_p5, %p1587_p4 }
  0x10   :  { %p1590_p7 = pnand %p1589_p6, %p1583_p3 }
  0x12   :  { %1593 = shalt.err (!%p1590_p7)
}
  0x13   :  { %s1737_s27 = smov 256   ;;  %s1738_s28 = smov 16  }
  0x14   :  { %44 = dma.hbm_to_vmem [thread:$0]  %s1973_s1, 1024, %s39_s18, [#allocation6], %s1737_s27, %s1737_s27, %s1738_s28  }
  0x15   :  { %s1739_s12 = smov [#allocation8]   ;;  %s1740_s14 = smov [#allocation2]  }
  0x16   :  { %s66_s13 = sshll.u32 %s1739_s12, 4  ;;  %s26_s15 = sshll.u32 %s1740_s14, 4  ;;  %s67_s13 = int_to_ptr.vmem [resolvable:$true] %s66_s13  ;;  %s27_s15 = int_to_ptr.vmem [resolvable:$true] %s26_s15 }
  0x17   :  { %s1594_s19 = scalar_lea.hbm %s1977_s5, 2048 }
  0x18   :  { %p1595_p8 = scmp.ne.s32.totalorder %s1977_s5, %s1594_s19  ;;  %p1598_p9 = scmp.lt.u32.totalorder %s1594_s19, %s1977_s5 }
  0x1a   :  { %p1600_p10 = pnand %p1598_p9, %p1595_p8 }
  0x1c   :  { %1603 = shalt.err (!%p1600_p10)
}
  0x1d   :  { %s1604_s1 = scalar_lea.vmem %s67_s13, 2048  ;;  %p1609_p12 = scmp.lt.s32.totalorder %s67_s13, %s67_s13 }
  0x1e   :  { %p1605_p11 = scmp.ne.s32.totalorder %s67_s13, %s1604_s1  ;;  %p1610_p13 = scmp.lt.s32.totalorder %s1604_s1, %s1604_s1 }
  0x20   :  { %p1611_p0 = por %p1610_p13, %p1609_p12 }
  0x22   :  { %p1612_p1 = pnand %p1611_p0, %p1605_p11 }
  0x24   :  { %1615 = shalt.err (!%p1612_p1)
}
  0x25   :  { %s1741_s18 = smov 64   ;;  %s1742_s24 = smov 4  }
  0x26   :  { %72 = dma.hbm_to_vmem [thread:$0]  %s1977_s5, 2048, %s67_s13, [#allocation9], %s1741_s18, %s1741_s18, %s1742_s24  }
  0x27   :  { %s1616_s29 = scalar_lea.hbm %s1972_s0, 128 }
  0x28   :  { %p1617_p2 = scmp.ne.s32.totalorder %s1972_s0, %s1616_s29  ;;  %p1620_p3 = scmp.lt.u32.totalorder %s1616_s29, %s1972_s0 }
  0x2a   :  { %p1622_p4 = pnand %p1620_p3, %p1617_p2 }
  0x2c   :  { %1625 = shalt.err (!%p1622_p4)
}
  0x2d   :  { %s1626_s17 = scalar_lea.vmem %s27_s15, 128  ;;  %p1631_p6 = scmp.lt.s32.totalorder %s27_s15, %s27_s15 }
  0x2e   :  { %p1627_p5 = scmp.ne.s32.totalorder %s27_s15, %s1626_s17  ;;  %p1632_p7 = scmp.lt.s32.totalorder %s1626_s17, %s1626_s17 }
  0x30   :  { %p1633_p8 = por %p1632_p7, %p1631_p6 }
  0x32   :  { %p1634_p9 = pnand %p1633_p8, %p1627_p5 }
  0x34   :  { %1637 = shalt.err (!%p1634_p9)
}
  0x35   :  { %32 = dma.hbm_to_vmem [thread:$0]  %s1972_s0, 128, %s27_s15, [#allocation3], %s1741_s18, %s1741_s18, %s1742_s24  }
  0x36   :  { %s1743_s19 = smov [#allocation7]   ;;  %s1638_s23 = scalar_lea.hbm %s1975_s3, 8192 }
  0x37   :  { %s52_s20 = sshll.u32 %s1743_s19, 4  ;;  %p1639_p10 = scmp.ne.s32.totalorder %s1975_s3, %s1638_s23  ;;  %s53_s20 = int_to_ptr.vmem [resolvable:$true] %s52_s20 }
  0x38   :  { %p1642_p11 = scmp.lt.u32.totalorder %s1638_s23, %s1975_s3 }
  0x3a   :  { %p1644_p12 = pnand %p1642_p11, %p1639_p10 }
  0x3c   :  { %1647 = shalt.err (!%p1644_p12)
}
  0x3d   :  { %s1648_s28 = scalar_lea.vmem %s53_s20, 8192  ;;  %p1653_p0 = scmp.lt.s32.totalorder %s53_s20, %s53_s20 }
  0x3e   :  { %p1649_p13 = scmp.ne.s32.totalorder %s53_s20, %s1648_s28  ;;  %p1654_p1 = scmp.lt.s32.totalorder %s1648_s28, %s1648_s28 }
  0x40   :  { %p1655_p2 = por %p1654_p1, %p1653_p0 }
  0x42   :  { %p1656_p3 = pnand %p1655_p2, %p1649_p13 }
  0x44   :  { %1659 = shalt.err (!%p1656_p3)
}
  0x45   :  { %s1744_s0 = smov 128   ;;  %s1745_s15 = smov 8  }
  0x46   :  { %58 = dma.hbm_to_vmem [thread:$0]  %s1975_s3, 8192, %s53_s20, [#allocation6], %s1744_s0, %s1744_s0, %s1745_s15  }
  0x47   :  { %s1746_s12 = smov [#allocation10]   ;;  %s1747_s16 = smov [#allocation11]  }
  0x48   :  { %s80_s14 = sshll.u32 %s1746_s12, 4  ;;  %s94_s17 = sshll.u32 %s1747_s16, 4  ;;  %s81_s14 = int_to_ptr.vmem [resolvable:$true] %s80_s14  ;;  %s1869_s17 = int_to_ptr.vmem [resolvable:$true] %s94_s17 }
  0x49   :  { %s1660_s19 = scalar_lea.hbm %s1979_s7, 1024 }
  0x4a   :  { %p1661_p4 = scmp.ne.s32.totalorder %s1979_s7, %s1660_s19  ;;  %p1664_p5 = scmp.lt.u32.totalorder %s1660_s19, %s1979_s7 }
  0x4c   :  { %p1666_p6 = pnand %p1664_p5, %p1661_p4 }
  0x4e   :  { %1669 = shalt.err (!%p1666_p6)
}
  0x4f   :  { %s1670_s3 = scalar_lea.vmem %s81_s14, 1024  ;;  %p1675_p8 = scmp.lt.s32.totalorder %s81_s14, %s81_s14 }
  0x50   :  { %p1671_p7 = scmp.ne.s32.totalorder %s81_s14, %s1670_s3  ;;  %p1676_p9 = scmp.lt.s32.totalorder %s1670_s3, %s1670_s3 }
  0x52   :  { %p1677_p10 = por %p1676_p9, %p1675_p8 }
  0x54   :  { %p1678_p11 = pnand %p1677_p10, %p1671_p7 }
  0x56   :  { %1681 = shalt.err (!%p1678_p11)
}
  0x57   :  { %86 = dma.hbm_to_vmem [thread:$0]  %s1979_s7, 1024, %s81_s14, [#allocation9], %s1741_s18, %s1741_s18, %s1742_s24  }
  0x58   :  { %s1682_s28 = scalar_lea.hbm %s1981_s9, 1024 }
  0x59   :  { %p1683_p12 = scmp.ne.s32.totalorder %s1981_s9, %s1682_s28  ;;  %p1686_p13 = scmp.lt.u32.totalorder %s1682_s28, %s1981_s9 }
  0x5b   :  { %p1688_p0 = pnand %p1686_p13, %p1683_p12 }
  0x5d   :  { %1691 = shalt.err (!%p1688_p0)
}
  0x5e   :  { %s1692_s5 = scalar_lea.vmem %s1869_s17, 1024  ;;  %p1697_p2 = scmp.lt.s32.totalorder %s1869_s17, %s1869_s17 }
  0x5f   :  { %p1693_p1 = scmp.ne.s32.totalorder %s1869_s17, %s1692_s5  ;;  %p1698_p3 = scmp.lt.s32.totalorder %s1692_s5, %s1692_s5 }
  0x61   :  { %p1699_p4 = por %p1698_p3, %p1697_p2 }
  0x63   :  { %p1700_p5 = pnand %p1699_p4, %p1693_p1 }
  0x65   :  { %1703 = shalt.err (!%p1700_p5)
}
  0x66   :  { %100 = dma.hbm_to_vmem [thread:$0]  %s1981_s9, 1024, %s1869_s17, [#allocation12], %s1741_s18, %s1741_s18, %s1742_s24  }
  0x67   :  { %1726 = dma.done.wait [#allocation3], 128  }
  0x68   :  { %1727 = vsyncadd [#allocation3], 4294967168 }
  0x69   :  { %1728 = dma.done.wait [#allocation6], 9216  }
  0x6a   :  { %1729 = vsyncadd [#allocation6], 4294958080 }
  0x6b   :  { %1730 = dma.done.wait [#allocation9], 3072  }
  0x6c   :  { %1731 = vsyncadd [#allocation9], 4294964224 }
  0x6d   :  { %1732 = dma.done.wait [#allocation12], 1024  }
  0x6e   :  { %1733 = vsyncadd [#allocation12], 4294966272  ;;  %v1748_v0 = vmov 0   ;;  %v1431_v1 = vld [vmem:[#allocation5 + $0x4] ss:$16 sps:$4 sm:$0xff]   ;;  %v1437_v6 = vld [vmem:[#allocation2] sm:$0xff]   ;;  %v134_v54 = vlaneseq }
  0x6f   :  { %235 = vmatprep.mubr.bf16.mxu1 %v1748_v0  ;;  %v1433_v2 = vld [vmem:[#allocation5] ss:$16 sps:$4 sm:$0xff]   ;;  %203 = vmatprep.subr.bf16.mxu1 %v1431_v1  ;;  %v1434_v3 = vld [vmem:[#allocation5 + $0x24] ss:$16 sps:$4 sm:$0xff]   ;;  %v1440_v5 = vld [vmem:[#allocation5 + $0xc] ss:$16 sps:$4 sm:$0xff]  }
  0x70   :  { %204 = vmatpush1.bf16.msra.mxu1 %v1433_v2  ;;  %v1436_v4 = vld [vmem:[#allocation5 + $0x20] ss:$16 sps:$4 sm:$0xff]   ;;  %v1438_v7 = vld [vmem:[#allocation5 + $0x8] ss:$16 sps:$4 sm:$0xff]   ;;  %vm199_vm0 = vcmask 261120   ;;  %v1908_v55 = vshrl.u32 %v134_v54, 7 }
  0x71   :  { %205 = vmatprep.subr.bf16.mxu1 %v1434_v3  ;;  %v1444_v8 = vld [vmem:[#allocation7 + $0x4] ss:$8 sps:$4 sm:$0xff]   ;;  %v1446_v9 = vld [vmem:[#allocation7] ss:$8 sps:$4 sm:$0xff]   ;;  %v1447_v11 = vld [vmem:[#allocation7 + $0x14] ss:$8 sps:$4 sm:$0xff]  }
  0x72   :  { %v1443_v10 = vld [vmem:[#allocation5 + $0x2c] ss:$16 sps:$4 sm:$0xff]   ;;  %697 = vmatprep.subr.bf16.mxu0 %v1444_v8  ;;  %v1449_v12 = vld [vmem:[#allocation7 + $0x10] ss:$8 sps:$4 sm:$0xff]   ;;  %v1452_v15 = vld [vmem:[#allocation7 + $0x20] ss:$8 sps:$4 sm:$0xff]  }
  0x73   :  { %698 = vmatpush1.bf16.msra.mxu0 %v1446_v9  ;;  %v1441_v13 = vld [vmem:[#allocation5 + $0x28] ss:$16 sps:$4 sm:$0xff]   ;;  %v1450_v14 = vld [vmem:[#allocation7 + $0x24] ss:$8 sps:$4 sm:$0xff]   ;;  %v1453_v16 = vld [vmem:[#allocation7 + $0x34] ss:$8 sps:$4 sm:$0xff]  }
  0x74   :  { %206 = vmatpush1.bf16.msra.mxu1 %v1436_v4  ;;  %699 = vmatprep.subr.bf16.mxu0 %v1447_v11  ;;  %v1455_v17 = vld [vmem:[#allocation7 + $0x30] ss:$8 sps:$4 sm:$0xff]   ;;  %v1456_v18 = vld [vmem:[#allocation7 + $0x44] ss:$8 sps:$4 sm:$0xff]   ;;  %v1458_v19 = vld [vmem:[#allocation7 + $0x40] ss:$8 sps:$4 sm:$0xff]  }
  0x75   :  { %246 = vmatprep.subr.bf16.mxu1 %v1440_v5  ;;  %v1459_v20 = vld [vmem:[#allocation7 + $0x54] ss:$8 sps:$4 sm:$0xff]   ;;  %v1461_v21 = vld [vmem:[#allocation7 + $0x50] ss:$8 sps:$4 sm:$0xff]   ;;  %v1462_v22 = vld [vmem:[#allocation7 + $0x64] ss:$8 sps:$4 sm:$0xff]  }
  0x76   :  { %v1464_v23 = vld [vmem:[#allocation7 + $0x60] ss:$8 sps:$4 sm:$0xff]   ;;  %v1465_v24 = vld [vmem:[#allocation7 + $0x74] ss:$8 sps:$4 sm:$0xff]   ;;  %v1467_v25 = vld [vmem:[#allocation7 + $0x70] ss:$8 sps:$4 sm:$0xff]  }
  0x77   :  { %1226 = vmatmul.mubr.msk.bf16.vlgmr.msra.gmra.mrb[0].mxu1 %vm199_vm0, %v1437_v6  ;;  %700 = vmatpush1.bf16.msra.mxu0 %v1449_v12  ;;  %v1468_v26 = vld [vmem:[#allocation7 + $0x84] ss:$8 sps:$4 sm:$0xff]   ;;  %v1470_v27 = vld [vmem:[#allocation7 + $0x80] ss:$8 sps:$4 sm:$0xff]   ;;  %v1471_v28 = vld [vmem:[#allocation7 + $0x94] ss:$8 sps:$4 sm:$0xff]  }
  0x78   :  { %247 = vmatpush1.bf16.msra.mxu1 %v1438_v7  ;;  %278 = vmatprep.mubr.bf16.mxu1 %v1748_v0  ;;  %v1473_v29 = vld [vmem:[#allocation7 + $0x90] ss:$8 sps:$4 sm:$0xff]   ;;  %v1474_v30 = vld [vmem:[#allocation7 + $0xa4] ss:$8 sps:$4 sm:$0xff]   ;;  %v1476_v31 = vld [vmem:[#allocation7 + $0xa0] ss:$8 sps:$4 sm:$0xff]  }
  0x79   :  { %248 = vmatprep.subr.bf16.mxu1 %v1443_v10  ;;  %701 = vmatprep.subr.bf16.mxu0 %v1450_v14  ;;  %v1477_v32 = vld [vmem:[#allocation7 + $0xb4] ss:$8 sps:$4 sm:$0xff]   ;;  %v1479_v33 = vld [vmem:[#allocation7 + $0xb0] ss:$8 sps:$4 sm:$0xff]   ;;  %v1480_v34 = vld [vmem:[#allocation7 + $0xc4] ss:$8 sps:$4 sm:$0xff]  }
  0x7a   :  { %v1482_v35 = vld [vmem:[#allocation7 + $0xc0] ss:$8 sps:$4 sm:$0xff]   ;;  %v1483_v36 = vld [vmem:[#allocation7 + $0xd4] ss:$8 sps:$4 sm:$0xff]   ;;  %v1485_v37 = vld [vmem:[#allocation7 + $0xd0] ss:$8 sps:$4 sm:$0xff]  }
  0x7b   :  { %702 = vmatpush1.bf16.msra.mxu0 %v1452_v15  ;;  %v1486_v38 = vld [vmem:[#allocation7 + $0xe4] ss:$8 sps:$4 sm:$0xff]   ;;  %v1488_v39 = vld [vmem:[#allocation7 + $0xe0] ss:$8 sps:$4 sm:$0xff]   ;;  %v1489_v40 = vld [vmem:[#allocation7 + $0xf4] ss:$8 sps:$4 sm:$0xff]  }
  0x7c   :  { %249 = vmatpush1.bf16.msra.mxu1 %v1441_v13  ;;  %703 = vmatprep.subr.bf16.mxu0 %v1453_v16  ;;  %v1491_v41 = vld [vmem:[#allocation7 + $0xf0] ss:$8 sps:$4 sm:$0xff]   ;;  %v1494_v42 = vld [vmem:[#allocation7 + $0x104] ss:$8 sps:$4 sm:$0xff]   ;;  %v136_v56 = vsub.s32 0, %v1908_v55  ;;  %v140_v58 = vsub.s32 1, %v1908_v55 }
  0x7d   :  { %v1540_v43 = vld [vmem:[#allocation8 + $0x40] sm:$0xff]   ;;  %v1542_v45 = vld [vmem:[#allocation8 + $0x48] sm:$0xff]   ;;  %v1544_v47 = vld [vmem:[#allocation8 + $0x50] sm:$0xff]   ;;  %v144_v0 = vsub.s32 2, %v1908_v55  ;;  %v148_v3 = vsub.s32 3, %v1908_v55  ;;  %vm1750_vm1 = vmmov 0  }
  0x7e   :  { %v1541_v44 = vld [vmem:[#allocation8] sm:$0xff]   ;;  %1327 = vmatprep.subr.bf16.mxu1 %v1540_v43  ;;  %v1543_v46 = vld [vmem:[#allocation8 + $0x8] sm:$0xff]   ;;  %v1545_v48 = vld [vmem:[#allocation8 + $0x10] sm:$0xff]   ;;  %s1751_s22 = smov [#allocation13]  }
  0x7f   :  { %1227 = vmatmul.mubr.msk.bf16.vlgmr.msra.gmra.mrb[4].mxu1 %vm199_vm0, %v1437_v6  ;;  %704 = vmatpush1.bf16.msra.mxu0 %v1455_v17  ;;  %v1546_v49 = vld [vmem:[#allocation8 + $0x58] sm:$0xff]   ;;  %v1548_v51 = vld [vmem:[#allocation8 + $0x60] sm:$0xff]   ;;  %v1550_v53 = vld [vmem:[#allocation8 + $0x68] sm:$0xff]   ;;  %s1202_s23 = sshll.u32 %s1751_s22, 4  ;;  %s1203_s23 = int_to_ptr.vmem [resolvable:$true] %s1202_s23 }
  0x80   :  { %705 = vmatprep.subr.bf16.mxu0 %v1456_v18  ;;  %1328 = vmatpush3.bf16.msra.mxu1 %v1541_v44  ;;  %v1547_v50 = vld [vmem:[#allocation8 + $0x18] sm:$0xff]   ;;  %v1549_v52 = vld [vmem:[#allocation8 + $0x20] sm:$0xff]   ;;  %v1557_v55 = vld [vmem:[#allocation10 + $0x8] sm:$0xff]   ;;  %p1709_p7 = scmp.lt.s32.totalorder %s1203_s23, %s1203_s23 }
  0x81   :  { %1329 = vmatprep.subr.bf16.mxu1 %v1542_v45  ;;  %v132_v57 = vld [vmem:[%s1974_s2] sm:$0xf]  ;;  %v1492_v15 = vld [vmem:[#allocation7 + $0x100] ss:$8 sps:$4 sm:$0xff]   ;;  %v1497_v17 = vld [vmem:[#allocation7 + $0x114] ss:$8 sps:$4 sm:$0xff]  }
  0x82   :  { %v137_v59 = vrot.slane %v132_v57, %v136_v56  ;;  %v141_v60 = vrot.slane %v132_v57, %v140_v58  ;;  %v145_v9 = vrot.slane %v132_v57, %v144_v0  ;;  %v149_v12 = vrot.slane %v132_v57, %v148_v3  ;;  %v1513_v43 = vld [vmem:[#allocation7 + $0x170] ss:$8 sps:$4 sm:$0xff]   ;;  %v1518_v44 = vld [vmem:[#allocation7 + $0x184] ss:$8 sps:$4 sm:$0xff]   ;;  %v1516_v45 = vld [vmem:[#allocation7 + $0x180] ss:$8 sps:$4 sm:$0xff]  }
  0x83   :  { %706 = vmatpush1.bf16.msra.mxu0 %v1458_v19  ;;  %v1533_v54 = vld [vmem:[#allocation7 + $0x1d4] ss:$8 sps:$4 sm:$0xff]   ;;  %v1531_v57 = vld [vmem:[#allocation7 + $0x1d0] ss:$8 sps:$4 sm:$0xff]  }
  0x84   :  { %707 = vmatprep.subr.bf16.mxu0 %v1459_v20  ;;  %1330 = vmatpush3.bf16.msra.mxu1 %v1543_v46  ;;  %v1521_v46 = vld [vmem:[#allocation7 + $0x194] ss:$8 sps:$4 sm:$0xff]  }
  0x85   :  { %1331 = vmatprep.subr.bf16.mxu1 %v1544_v47  ;;  %v1519_v47 = vld [vmem:[#allocation7 + $0x190] ss:$8 sps:$4 sm:$0xff]  }
  0x86   :  { %v1552_v0 = vld [vmem:[#allocation8 + $0x70] sm:$0xff]   ;;  %v1555_v3 = vld [vmem:[#allocation8 + $0x38] sm:$0xff]  }
  0x87   :  { %708 = vmatpush1.bf16.msra.mxu0 %v1461_v21 }
  0x88   :  { %709 = vmatprep.subr.bf16.mxu0 %v1462_v22  ;;  %1332 = vmatpush3.bf16.msra.mxu1 %v1545_v48  ;;  %v1524_v48 = vld [vmem:[#allocation7 + $0x1a4] ss:$8 sps:$4 sm:$0xff]  }
  0x89   :  { %1333 = vmatprep.subr.bf16.mxu1 %v1546_v49  ;;  %v1522_v49 = vld [vmem:[#allocation7 + $0x1a0] ss:$8 sps:$4 sm:$0xff]  }
  0x8b   :  { %710 = vmatpush1.bf16.msra.mxu0 %v1464_v23 }
  0x8c   :  { %711 = vmatprep.subr.bf16.mxu0 %v1465_v24  ;;  %1334 = vmatpush3.bf16.msra.mxu1 %v1547_v50  ;;  %v1527_v50 = vld [vmem:[#allocation7 + $0x1b4] ss:$8 sps:$4 sm:$0xff]  }
  0x8d   :  { %1335 = vmatprep.subr.bf16.mxu1 %v1548_v51  ;;  %v1525_v51 = vld [vmem:[#allocation7 + $0x1b0] ss:$8 sps:$4 sm:$0xff]  }
  0x8f   :  { %712 = vmatpush1.bf16.msra.mxu0 %v1467_v25  ;;  %v1495_v25 = vld [vmem:[#allocation7 + $0x110] ss:$8 sps:$4 sm:$0xff]  }
  0x90   :  { %713 = vmatprep.subr.bf16.mxu0 %v1468_v26  ;;  %1336 = vmatpush3.bf16.msra.mxu1 %v1549_v52  ;;  %v1530_v52 = vld [vmem:[#allocation7 + $0x1c4] ss:$8 sps:$4 sm:$0xff]  }
  0x91   :  { %1337 = vmatprep.subr.bf16.mxu1 %v1550_v53  ;;  %v1528_v53 = vld [vmem:[#allocation7 + $0x1c0] ss:$8 sps:$4 sm:$0xff]  }
  0x93   :  { %714 = vmatpush1.bf16.msra.mxu0 %v1470_v27 }
  0x94   :  { %715 = vmatprep.subr.bf16.mxu0 %v1471_v28  ;;  %v1500_v28 = vld [vmem:[#allocation7 + $0x124] ss:$8 sps:$4 sm:$0xff]  }
  0x97   :  { %716 = vmatpush1.bf16.msra.mxu0 %v1473_v29 }
  0x98   :  { %717 = vmatprep.subr.bf16.mxu0 %v1474_v30 }
  0x9b   :  { %718 = vmatpush1.bf16.msra.mxu0 %v1476_v31 }
  0x9c   :  { %719 = vmatprep.subr.bf16.mxu0 %v1477_v32  ;;  %v1498_v32 = vld [vmem:[#allocation7 + $0x120] ss:$8 sps:$4 sm:$0xff]  }
  0x9f   :  { %720 = vmatpush1.bf16.msra.mxu0 %v1479_v33 }
  0xa0   :  { %721 = vmatprep.subr.bf16.mxu0 %v1480_v34  ;;  %v1503_v34 = vld [vmem:[#allocation7 + $0x134] ss:$8 sps:$4 sm:$0xff]  }
  0xa3   :  { %722 = vmatpush1.bf16.msra.mxu0 %v1482_v35  ;;  %v1501_v35 = vld [vmem:[#allocation7 + $0x130] ss:$8 sps:$4 sm:$0xff]  }
  0xa4   :  { %723 = vmatprep.subr.bf16.mxu0 %v1483_v36  ;;  %v1506_v36 = vld [vmem:[#allocation7 + $0x144] ss:$8 sps:$4 sm:$0xff]  }
  0xa7   :  { %724 = vmatpush1.bf16.msra.mxu0 %v1485_v37  ;;  %v1504_v37 = vld [vmem:[#allocation7 + $0x140] ss:$8 sps:$4 sm:$0xff]  }
  0xa8   :  { %725 = vmatprep.subr.bf16.mxu0 %v1486_v38  ;;  %v1509_v38 = vld [vmem:[#allocation7 + $0x154] ss:$8 sps:$4 sm:$0xff]  }
  0xab   :  { %726 = vmatpush1.bf16.msra.mxu0 %v1488_v39  ;;  %v1507_v39 = vld [vmem:[#allocation7 + $0x150] ss:$8 sps:$4 sm:$0xff]  }
  0xac   :  { %727 = vmatprep.subr.bf16.mxu0 %v1489_v40  ;;  %v1512_v40 = vld [vmem:[#allocation7 + $0x164] ss:$8 sps:$4 sm:$0xff]  }
  0xaf   :  { %728 = vmatpush1.bf16.msra.mxu0 %v1491_v41  ;;  %v1510_v41 = vld [vmem:[#allocation7 + $0x160] ss:$8 sps:$4 sm:$0xff]  }
  0xb0   :  { %740 = vmatprep.subr.bf16.mxu0 %v1494_v42  ;;  %v1515_v42 = vld [vmem:[#allocation7 + $0x174] ss:$8 sps:$4 sm:$0xff]  }
 0x14a   :  { %v237_v61 = vpop.f32.mrb[0].mxu1 }
 0x14b   :  { %v238_v62 = vadd.f32 %v237_v61, %v137_v59  ;;  %v239_v63 = vpop.f32.mrb[1].mxu1  ;;  %v1539_v61 = vld [vmem:[#allocation7 + $0x1f4] ss:$8 sps:$4 sm:$0xff]  }
 0x14c   :  { %v240_v1 = vadd.f32 %v239_v63, %v141_v60  ;;  %v241_v2 = vpop.f32.mrb[2].mxu1  ;;  %v1551_v63 = vld [vmem:[#allocation8 + $0x28] sm:$0xff]  }
 0x14d   :  { %v242_v4 = vadd.f32 %v241_v2, %v137_v59  ;;  %v243_v5 = vpop.f32.mrb[3].mxu1  ;;  %v289_v7 = vmax.f32 %v238_v62, 0.0  ;;  %v1536_v59 = vld [vmem:[#allocation7 + $0x1e4] ss:$8 sps:$4 sm:$0xff]   ;;  %v1537_v62 = vld [vmem:[#allocation7 + $0x1f0] ss:$8 sps:$4 sm:$0xff]   ;;  %1338 = vmatpush3.bf16.msra.mxu1 %v1551_v63 }
 0x14e   :  { %v244_v6 = vadd.f32 %v243_v5, %v141_v60  ;;  %v290_v10 = vmax.f32 %v240_v1, 0.0  ;;  %v1534_v60 = vld [vmem:[#allocation7 + $0x1e0] ss:$8 sps:$4 sm:$0xff]   ;;  %v1553_v1 = vld [vmem:[#allocation8 + $0x30] sm:$0xff]   ;;  %1339 = vmatprep.subr.bf16.mxu1 %v1552_v0  ;;  %v1554_v2 = vld [vmem:[#allocation8 + $0x78] sm:$0xff]  }
 0x14f   :  { %v293_v8 = vmax.f32 %v242_v4, 0.0  ;;  %v1749_v4 = vmov 0.0   ;;  %v365_v5 = vld [vmem:[%s1976_s4] sm:$0x3] }
 0x150   :  { %v294_v11 = vmax.f32 %v244_v6, 0.0  ;;  %v370_v6 = vrot.slane %v365_v5, %v136_v56  ;;  %v1558_v56 = vld [vmem:[#allocation10 + $0x10] sm:$0xff]  }
 0x151   :  { %v297_v13 = vpack.c.bf16 %v293_v8, %v289_v7  ;;  %1340 = vmatpush3.bf16.msra.mxu1 %v1553_v1  ;;  %v374_v7 = vrot.slane %v365_v5, %v140_v58  ;;  %v1559_v58 = vld [vmem:[#allocation10 + $0x18] sm:$0xff]  }
 0x152   :  { %v298_v14 = vpack.c.bf16 %v294_v11, %v290_v10  ;;  %v280_v16 = vpop.f32.mrb[4].mxu1  ;;  %1341 = vmatprep.subr.bf16.mxu1 %v1554_v2 }
 0x153   :  { %v281_v18 = vadd.f32 %v280_v16, %v145_v9  ;;  %v282_v19 = vpop.f32.mrb[5].mxu1 }
 0x154   :  { %729 = vmatprep.mubr.bf16.mxu0 %v298_v14  ;;  %v283_v20 = vadd.f32 %v282_v19, %v149_v12  ;;  %v284_v21 = vpop.f32.mrb[6].mxu1 }
 0x155   :  { %730 = vmatmul.mubr.bf16.vlgmr.msra.gmra.mrb[0].mxu0 %v297_v13  ;;  %v291_v22 = vmax.f32 %v281_v18, 0.0  ;;  %v285_v23 = vadd.f32 %v284_v21, %v145_v9  ;;  %v286_v24 = vpop.f32.mrb[7].mxu1  ;;  %1342 = vmatpush3.bf16.msra.mxu1 %v1555_v3 }
 0x156   :  { %741 = vmatpush1.bf16.msra.mxu0 %v1492_v15  ;;  %v292_v26 = vmax.f32 %v283_v20, 0.0  ;;  %v287_v27 = vadd.f32 %v286_v24, %v149_v12  ;;  %1367 = vmatprep.subr.bf16.mxu1 %v1749_v4  ;;  %v1561_v24 = vld [vmem:[#allocation10 + $0x28] sm:$0xff]  }
 0x157   :  { %742 = vmatprep.subr.bf16.mxu0 %v1497_v17  ;;  %v295_v29 = vmax.f32 %v285_v23, 0.0  ;;  %v1560_v23 = vld [vmem:[#allocation10 + $0x20] sm:$0xff]  }
 0x158   :  { %v296_v30 = vmax.f32 %v287_v27, 0.0 }
 0x159   :  { %v299_v31 = vpack.c.bf16 %v295_v29, %v291_v22  ;;  %v1556_v22 = vld [vmem:[#allocation10] sm:$0xff]  }
 0x15a   :  { %743 = vmatpush1.bf16.msra.mxu0 %v1495_v25  ;;  %v300_v33 = vpack.c.bf16 %v296_v30, %v292_v26  ;;  %v1562_v25 = vld [vmem:[#allocation10 + $0x30] sm:$0xff]   ;;  %v1563_v26 = vld [vmem:[#allocation10 + $0x38] sm:$0xff]  }
 0x15b   :  { %744 = vmatprep.subr.bf16.mxu0 %v1500_v28  ;;  %v1292_v28 = vld [vmem:[%s1978_s6] ss:$0 sm:$0xff] }
 0x15c   :  { %772 = vmatprep.mubr.bf16.mxu0 %v300_v33 }
 0x15e   :  { %745 = vmatpush1.bf16.msra.mxu0 %v1498_v32 }
 0x15f   :  { %746 = vmatprep.subr.bf16.mxu0 %v1503_v34 }
 0x162   :  { %747 = vmatpush1.bf16.msra.mxu0 %v1501_v35 }
 0x163   :  { %748 = vmatprep.subr.bf16.mxu0 %v1506_v36 }
 0x166   :  { %749 = vmatpush1.bf16.msra.mxu0 %v1504_v37 }
 0x167   :  { %750 = vmatprep.subr.bf16.mxu0 %v1509_v38  ;;  %v1564_v38 = vld [vmem:[#allocation11] sm:$0xff]  }
 0x16a   :  { %751 = vmatpush1.bf16.msra.mxu0 %v1507_v39 }
 0x16b   :  { %752 = vmatprep.subr.bf16.mxu0 %v1512_v40  ;;  %v1565_v40 = vld [vmem:[#allocation11 + $0x8] sm:$0xff]  }
 0x16e   :  { %753 = vmatpush1.bf16.msra.mxu0 %v1510_v41  ;;  %v1566_v41 = vld [vmem:[#allocation11 + $0x10] sm:$0xff]  }
 0x16f   :  { %754 = vmatprep.subr.bf16.mxu0 %v1515_v42  ;;  %v1567_v42 = vld [vmem:[#allocation11 + $0x18] sm:$0xff]  }
 0x172   :  { %755 = vmatpush1.bf16.msra.mxu0 %v1513_v43  ;;  %v1568_v43 = vld [vmem:[#allocation11 + $0x20] sm:$0xff]  }
 0x173   :  { %756 = vmatprep.subr.bf16.mxu0 %v1518_v44  ;;  %v1569_v44 = vld [vmem:[#allocation11 + $0x28] sm:$0xff]  }
 0x176   :  { %757 = vmatpush1.bf16.msra.mxu0 %v1516_v45  ;;  %v1570_v45 = vld [vmem:[#allocation11 + $0x30] sm:$0xff]  }
 0x177   :  { %758 = vmatprep.subr.bf16.mxu0 %v1521_v46  ;;  %v1571_v46 = vld [vmem:[#allocation11 + $0x38] sm:$0xff]  }
 0x17a   :  { %759 = vmatpush1.bf16.msra.mxu0 %v1519_v47  ;;  %v1309_v47 = vld [vmem:[%s1980_s8] ss:$0 sm:$0xff]  ;;  %s1704_s8 = scalar_lea.vmem %s1203_s23, 256 }
 0x17b   :  { %760 = vmatprep.subr.bf16.mxu0 %v1524_v48  ;;  %p1705_p6 = scmp.ne.s32.totalorder %s1203_s23, %s1704_s8  ;;  %p1710_p8 = scmp.lt.s32.totalorder %s1704_s8, %s1704_s8 }
 0x17d   :  { %p1711_p9 = por %p1710_p8, %p1709_p7 }
 0x17e   :  { %761 = vmatpush1.bf16.msra.mxu0 %v1522_v49 }
 0x17f   :  { %762 = vmatprep.subr.bf16.mxu0 %v1527_v50  ;;  %p1712_p10 = pnand %p1711_p9, %p1705_p6 }
 0x182   :  { %763 = vmatpush1.bf16.msra.mxu0 %v1525_v51 }
 0x183   :  { %764 = vmatprep.subr.bf16.mxu0 %v1530_v52 }
 0x186   :  { %765 = vmatpush1.bf16.msra.mxu0 %v1528_v53 }
 0x187   :  { %766 = vmatprep.subr.bf16.mxu0 %v1533_v54 }
 0x18a   :  { %767 = vmatpush1.bf16.msra.mxu0 %v1531_v57 }
 0x18b   :  { %768 = vmatprep.subr.bf16.mxu0 %v1536_v59 }
 0x18e   :  { %769 = vmatpush1.bf16.msra.mxu0 %v1534_v60  ;;  %v1318_v60 = vld [vmem:[%s1982_s10] ss:$0 sm:$0xff] }
 0x18f   :  { %770 = vmatprep.subr.bf16.mxu0 %v1539_v61 }
 0x192   :  { %771 = vmatpush1.bf16.msra.mxu0 %v1537_v62 }
 0x195   :  { %773 = vmatmul.mubr.bf16.vlgmr.msra.gmra.mrb[0].mxu0 %v299_v31 }
 0x268   :  { %v774_v8 = vpop.f32.mrb[0].mxu0 }
 0x269   :  { %v1407_v9 = vadd.f32 %v774_v8, %v370_v6  ;;  %v776_v10 = vpop.f32.mrb[1].mxu0 }
 0x26a   :  { %v1408_v11 = vadd.f32 %v776_v10, %v374_v7  ;;  %v778_v12 = vpop.f32.mrb[2].mxu0 }
 0x26b   :  { %v1409_v13 = vadd.f32 %v778_v12, %v370_v6  ;;  %v780_v14 = vpop.f32.mrb[3].mxu0  ;;  %v783_v16 = vmax.f32 %v1407_v9, 0.0 }
 0x26c   :  { %v1410_v15 = vadd.f32 %v780_v14, %v374_v7  ;;  %v784_v18 = vmax.f32 %v1408_v11, 0.0 }
 0x26d   :  { %v785_v17 = vmax.f32 %v1409_v13, 0.0 }
 0x26e   :  { %v786_v19 = vmax.f32 %v1410_v15, 0.0 }
 0x26f   :  { %v787_v20 = vpack.c.bf16 %v785_v17, %v783_v16 }
 0x270   :  { %v788_v21 = vpack.c.bf16 %v786_v19, %v784_v18 }
 0x272   :  { %956 = vmatprep.mubr.bf16.mxu1 %v788_v21 }
 0x273   :  { %957 = vmatmul.mubr.bf16.vlgmr.msra.gmra.mrb[8].mxu1 %v787_v20 }
 0x274   :  { %1368 = vmatpush3.bf16.msra.mxu1 %v1556_v22  ;;  %1383 = vmatprep.mubr.msk.bf16.mxu1 %vm1750_vm1, %v1749_v4 }
 0x275   :  { %1369 = vmatprep.subr.bf16.mxu1 %v1749_v4 }
 0x278   :  { %1370 = vmatpush3.bf16.msra.mxu1 %v1557_v55 }
 0x279   :  { %1371 = vmatprep.subr.bf16.mxu1 %v1749_v4 }
 0x27c   :  { %1372 = vmatpush3.bf16.msra.mxu1 %v1558_v56 }
 0x27d   :  { %1373 = vmatprep.subr.bf16.mxu1 %v1749_v4 }
 0x280   :  { %1374 = vmatpush3.bf16.msra.mxu1 %v1559_v58 }
 0x281   :  { %1375 = vmatprep.subr.bf16.mxu1 %v1749_v4 }
 0x284   :  { %1376 = vmatpush3.bf16.msra.mxu1 %v1560_v23 }
 0x285   :  { %1377 = vmatprep.subr.bf16.mxu1 %v1749_v4 }
 0x288   :  { %1378 = vmatpush3.bf16.msra.mxu1 %v1561_v24 }
 0x289   :  { %1379 = vmatprep.subr.bf16.mxu1 %v1749_v4 }
 0x28c   :  { %1380 = vmatpush3.bf16.msra.mxu1 %v1562_v25 }
 0x28d   :  { %1381 = vmatprep.subr.bf16.mxu1 %v1749_v4 }
 0x290   :  { %1382 = vmatpush3.bf16.msra.mxu1 %v1563_v26 }
 0x291   :  { %1387 = vmatprep.subr.bf16.mxu1 %v1749_v4 }
 0x346   :  { %v1343_v27 = vpop.f32.mrb[8].mxu1 }
 0x347   :  { %v1344_v29 = vpop.f32.mrb[9].mxu1 }
 0x348   :  { %v1345_v30 = vadd.f32 %v1344_v29, %v1343_v27  ;;  %v1346_v31 = vpop.f32.mrb[10].mxu1 }
 0x349   :  { %v1347_v32 = vpop.f32.mrb[11].mxu1 }
 0x34a   :  { %v959_v33 = vadd.f32 %v1345_v30, %v1292_v28  ;;  %v1348_v34 = vadd.f32 %v1347_v32, %v1346_v31 }
 0x34c   :  { %v962_v35 = vadd.f32 %v1348_v34, %v1292_v28  ;;  %v965_v36 = vmax.f32 %v959_v33, 0.0 }
 0x34e   :  { %v966_v37 = vmax.f32 %v962_v35, 0.0 }
 0x350   :  { %v967_v39 = vpack.c.bf16 %v966_v37, %v965_v36 }
 0x352   :  { %1384 = vmatmul.mubr.bf16.vlgmr.msra.gmra.mrb[12].mxu1 %v967_v39 }
 0x353   :  { %1388 = vmatpush3.bf16.msra.mxu1 %v1564_v38  ;;  %1403 = vmatprep.mubr.msk.bf16.mxu1 %vm1750_vm1, %v1749_v4 }
 0x354   :  { %1389 = vmatprep.subr.bf16.mxu1 %v1749_v4 }
 0x357   :  { %1390 = vmatpush3.bf16.msra.mxu1 %v1565_v40 }
 0x358   :  { %1391 = vmatprep.subr.bf16.mxu1 %v1749_v4 }
 0x35b   :  { %1392 = vmatpush3.bf16.msra.mxu1 %v1566_v41 }
 0x35c   :  { %1393 = vmatprep.subr.bf16.mxu1 %v1749_v4 }
 0x35f   :  { %1394 = vmatpush3.bf16.msra.mxu1 %v1567_v42 }
 0x360   :  { %1395 = vmatprep.subr.bf16.mxu1 %v1749_v4 }
 0x363   :  { %1396 = vmatpush3.bf16.msra.mxu1 %v1568_v43 }
 0x364   :  { %1397 = vmatprep.subr.bf16.mxu1 %v1749_v4 }
 0x367   :  { %1398 = vmatpush3.bf16.msra.mxu1 %v1569_v44 }
 0x368   :  { %1399 = vmatprep.subr.bf16.mxu1 %v1749_v4 }
 0x36b   :  { %1400 = vmatpush3.bf16.msra.mxu1 %v1570_v45 }
 0x36c   :  { %1401 = vmatprep.subr.bf16.mxu1 %v1749_v4 }
 0x36f   :  { %1402 = vmatpush3.bf16.msra.mxu1 %v1571_v46 }
 0x425   :  { %v1073_v48 = vpop.f32.mrb[12].mxu1 }
 0x426   :  { %v1074_v49 = vadd.f32 %v1309_v47, %v1073_v48  ;;  %v1385_v50 = vpop.f32.mrb[13].mxu1 }
 0x427   :  { %v1076_v51 = vpop.f32.mrb[14].mxu1 }
 0x428   :  { %v1077_v52 = vadd.f32 %v1309_v47, %v1076_v51  ;;  %v1386_v53 = vpop.f32.mrb[15].mxu1  ;;  %v1080_v54 = vmax.f32 %v1074_v49, 0.0 }
 0x42a   :  { %v1081_v57 = vmax.f32 %v1077_v52, 0.0 }
 0x42c   :  { %v1082_v59 = vpack.c.bf16 %v1081_v57, %v1080_v54 }
 0x42e   :  { %1404 = vmatmul.mubr.bf16.vlgmr.msra.gmra.mrb[16].mxu1 %v1082_v59 }
 0x501   :  { %v1188_v61 = vpop.f32.mrb[16].mxu1 }
 0x502   :  { %v1189_v62 = vadd.f32 %v1318_v60, %v1188_v61  ;;  %v1405_v63 = vpop.f32.mrb[17].mxu1 }
 0x503   :  { %v1191_v0 = vpop.f32.mrb[18].mxu1 }
 0x504   :  { %1195 = vst [vmem:[#allocation13] sm:$0xff] %v1189_v62  ;;  %v1192_v1 = vadd.f32 %v1318_v60, %v1191_v0  ;;  %v1406_v2 = vpop.f32.mrb[19].mxu1 }
 0x506   :  { %1196 = vst [vmem:[#allocation13 + $0x8] sm:$0xff] %v1192_v1 }
 0x507   :  { %1715 = shalt.err (!%p1712_p10)
}
 0x508   :  { %s1716_s3 = scalar_lea.hbm %s1983_s11, 256 }
 0x509   :  { %p1717_p11 = scmp.ne.s32.totalorder %s1983_s11, %s1716_s3  ;;  %p1720_p12 = scmp.lt.u32.totalorder %s1716_s3, %s1983_s11 }
 0x50b   :  { %p1722_p13 = pnand %p1720_p12, %p1717_p11 }
 0x50d   :  { %1725 = shalt.err (!%p1722_p13)
}
 0x50e   :  { %1208 = dma.vmem_to_hbm [thread:$0]  %s1203_s23, 256, %s1983_s11, [#allocation4], %s1744_s0, %s1744_s0, %s1745_s15  }
 0x50f   :  { %1734 = dma.done.wait [#allocation4], 256  }
 0x510   :  { %1735 = vsyncadd [#allocation4], 4294967040 }
 0x511   :  { %1212 = vsyncpa [#allocation3], 1 }
 0x512   :  { %1213 = vsyncpa [#allocation6], 1 }
 0x513   :  { %1214 = vsyncpa [#allocation9], 1 }
 0x514   :  { %1215 = vsyncpa [#allocation12], 1 }
 0x515   :  { %1216 = vsyncpa [#allocation4], 1 }

// kernel: tpu_custom_call.1
= control target key start
LH: loop header
LB: loop body
LE: loop exit
PB: predicated region body
PF: predicated region fallthrough
CT: control target
= control target key end

     0   :  { %16 = vsyncpa [#allocation3], 0  ;;  %s1972_s0 = inlined_call_operand.hbm [shape: bf16[16,32], index: 0, kind: input, shape index: {}]   ;;  %s1973_s1 = inlined_call_operand.hbm [shape: bf16[32,512], index: 1, kind: input, shape index: {}]   ;;  %s1974_s2 = inlined_call_operand.vmem [shape: f32[1,512], index: 2, kind: input, shape index: {}]   ;;  %s1975_s3 = inlined_call_operand.hbm [shape: bf16[512,256], index: 3, kind: input, shape index: {}]   ;;  %s1976_s4 = inlined_call_operand.vmem [shape: f32[1,256], index: 4, kind: input, shape index: {}]   ;;  %s1977_s5 = inlined_call_operand.hbm [shape: bf16[256,128], index: 5, kind: input, shape index: {}]   ;;  %s1978_s6 = inlined_call_operand.vmem [shape: f32[1,128], index: 6, kind: input, shape index: {}]   ;;  %s1979_s7 = inlined_call_operand.hbm [shape: bf16[128,128], index: 7, kind: input, shape index: {}]   ;;  %s1980_s8 = inlined_call_operand.vmem [shape: f32[1,128], index: 8, kind: input, shape index: {}]   ;;  %s1981_s9 = inlined_call_operand.hbm [shape: bf16[128,128], index: 9, kind: input, shape index: {}]   ;;  %s1982_s10 = inlined_call_operand.vmem [shape: f32[1,128], index: 10, kind: input, shape index: {}]   ;;  %s1983_s11 = inlined_call_operand.hbm [shape: f32[16,128], index: 11, kind: output, shape index: {}]  }
   0x1   :  { %17 = vsyncpa [#allocation6], 0 }
   0x2   :  { %18 = vsyncpa [#allocation9], 0 }
   0x3   :  { %19 = vsyncpa [#allocation12], 0 }
   0x4   :  { %20 = vsyncpa [#allocation4], 0  ;;  %s1736_s17 = smov [#allocation5]   ;;  %s1572_s21 = scalar_lea.hbm %s1973_s1, 1024 }
   0x5   :  { %s38_s18 = sshll.u32 %s1736_s17, 4  ;;  %p1573_p0 = scmp.ne.s32.totalorder %s1973_s1, %s1572_s21  ;;  %s39_s18 = int_to_ptr.vmem [resolvable:$true] %s38_s18 }
   0x6   :  { %p1576_p1 = scmp.lt.u32.totalorder %s1572_s21, %s1973_s1 }
   0x8   :  { %p1578_p2 = pnand %p1576_p1, %p1573_p0 }
   0xa   :  { %1581 = shalt.err (!%p1578_p2)
}
   0xb   :  { %s1582_s26 = scalar_lea.vmem %s39_s18, 1024  ;;  %p1587_p4 = scmp.lt.s32.totalorder %s39_s18, %s39_s18 }
   0xc   :  { %p1583_p3 = scmp.ne.s32.totalorder %s39_s18, %s1582_s26  ;;  %p1588_p5 = scmp.lt.s32.totalorder %s1582_s26, %s1582_s26 }
   0xe   :  { %p1589_p6 = por %p1588_p5, %p1587_p4 }
  0x10   :  { %p1590_p7 = pnand %p1589_p6, %p1583_p3 }
  0x12   :  { %1593 = shalt.err (!%p1590_p7)
}
  0x13   :  { %s1737_s27 = smov 256   ;;  %s1738_s28 = smov 16  }
  0x14   :  { %44 = dma.hbm_to_vmem [thread:$0]  %s1973_s1, 1024, %s39_s18, [#allocation6], %s1737_s27, %s1737_s27, %s1738_s28  }
  0x15   :  { %s1739_s12 = smov [#allocation8]   ;;  %s1740_s14 = smov [#allocation2]  }
  0x16   :  { %s66_s13 = sshll.u32 %s1739_s12, 4  ;;  %s26_s15 = sshll.u32 %s1740_s14, 4  ;;  %s67_s13 = int_to_ptr.vmem [resolvable:$true] %s66_s13  ;;  %s27_s15 = int_to_ptr.vmem [resolvable:$true] %s26_s15 }
  0x17   :  { %s1594_s19 = scalar_lea.hbm %s1977_s5, 2048 }
  0x18   :  { %p1595_p8 = scmp.ne.s32.totalorder %s1977_s5, %s1594_s19  ;;  %p1598_p9 = scmp.lt.u32.totalorder %s1594_s19, %s1977_s5 }
  0x1a   :  { %p1600_p10 = pnand %p1598_p9, %p1595_p8 }
  0x1c   :  { %1603 = shalt.err (!%p1600_p10)
}
  0x1d   :  { %s1604_s1 = scalar_lea.vmem %s67_s13, 2048  ;;  %p1609_p12 = scmp.lt.s32.totalorder %s67_s13, %s67_s13 }
  0x1e   :  { %p1605_p11 = scmp.ne.s32.totalorder %s67_s13, %s1604_s1  ;;  %p1610_p13 = scmp.lt.s32.totalorder %s1604_s1, %s1604_s1 }
  0x20   :  { %p1611_p0 = por %p1610_p13, %p1609_p12 }
  0x22   :  { %p1612_p1 = pnand %p1611_p0, %p1605_p11 }
  0x24   :  { %1615 = shalt.err (!%p1612_p1)
}
  0x25   :  { %s1741_s18 = smov 64   ;;  %s1742_s24 = smov 4  }
  0x26   :  { %72 = dma.hbm_to_vmem [thread:$0]  %s1977_s5, 2048, %s67_s13, [#allocation9], %s1741_s18, %s1741_s18, %s1742_s24  }
  0x27   :  { %s1616_s29 = scalar_lea.hbm %s1972_s0, 128 }
  0x28   :  { %p1617_p2 = scmp.ne.s32.totalorder %s1972_s0, %s1616_s29  ;;  %p1620_p3 = scmp.lt.u32.totalorder %s1616_s29, %s1972_s0 }
  0x2a   :  { %p1622_p4 = pnand %p1620_p3, %p1617_p2 }
  0x2c   :  { %1625 = shalt.err (!%p1622_p4)
}
  0x2d   :  { %s1626_s17 = scalar_lea.vmem %s27_s15, 128  ;;  %p1631_p6 = scmp.lt.s32.totalorder %s27_s15, %s27_s15 }
  0x2e   :  { %p1627_p5 = scmp.ne.s32.totalorder %s27_s15, %s1626_s17  ;;  %p1632_p7 = scmp.lt.s32.totalorder %s1626_s17, %s1626_s17 }
  0x30   :  { %p1633_p8 = por %p1632_p7, %p1631_p6 }
  0x32   :  { %p1634_p9 = pnand %p1633_p8, %p1627_p5 }
  0x34   :  { %1637 = shalt.err (!%p1634_p9)
}
  0x35   :  { %32 = dma.hbm_to_vmem [thread:$0]  %s1972_s0, 128, %s27_s15, [#allocation3], %s1741_s18, %s1741_s18, %s1742_s24  }
  0x36   :  { %s1743_s19 = smov [#allocation7]   ;;  %s1638_s23 = scalar_lea.hbm %s1975_s3, 8192 }
  0x37   :  { %s52_s20 = sshll.u32 %s1743_s19, 4  ;;  %p1639_p10 = scmp.ne.s32.totalorder %s1975_s3, %s1638_s23  ;;  %s53_s20 = int_to_ptr.vmem [resolvable:$true] %s52_s20 }
  0x38   :  { %p1642_p11 = scmp.lt.u32.totalorder %s1638_s23, %s1975_s3 }
  0x3a   :  { %p1644_p12 = pnand %p1642_p11, %p1639_p10 }
  0x3c   :  { %1647 = shalt.err (!%p1644_p12)
}
  0x3d   :  { %s1648_s28 = scalar_lea.vmem %s53_s20, 8192  ;;  %p1653_p0 = scmp.lt.s32.totalorder %s53_s20, %s53_s20 }
  0x3e   :  { %p1649_p13 = scmp.ne.s32.totalorder %s53_s20, %s1648_s28  ;;  %p1654_p1 = scmp.lt.s32.totalorder %s1648_s28, %s1648_s28 }
  0x40   :  { %p1655_p2 = por %p1654_p1, %p1653_p0 }
  0x42   :  { %p1656_p3 = pnand %p1655_p2, %p1649_p13 }
  0x44   :  { %1659 = shalt.err (!%p1656_p3)
}
  0x45   :  { %s1744_s0 = smov 128   ;;  %s1745_s15 = smov 8  }
  0x46   :  { %58 = dma.hbm_to_vmem [thread:$0]  %s1975_s3, 8192, %s53_s20, [#allocation6], %s1744_s0, %s1744_s0, %s1745_s15  }
  0x47   :  { %s1746_s12 = smov [#allocation10]   ;;  %s1747_s16 = smov [#allocation11]  }
  0x48   :  { %s80_s14 = sshll.u32 %s1746_s12, 4  ;;  %s94_s17 = sshll.u32 %s1747_s16, 4  ;;  %s81_s14 = int_to_ptr.vmem [resolvable:$true] %s80_s14  ;;  %s1869_s17 = int_to_ptr.vmem [resolvable:$true] %s94_s17 }
  0x49   :  { %s1660_s19 = scalar_lea.hbm %s1979_s7, 1024 }
  0x4a   :  { %p1661_p4 = scmp.ne.s32.totalorder %s1979_s7, %s1660_s19  ;;  %p1664_p5 = scmp.lt.u32.totalorder %s1660_s19, %s1979_s7 }
  0x4c   :  { %p1666_p6 = pnand %p1664_p5, %p1661_p4 }
  0x4e   :  { %1669 = shalt.err (!%p1666_p6)
}
  0x4f   :  { %s1670_s3 = scalar_lea.vmem %s81_s14, 1024  ;;  %p1675_p8 = scmp.lt.s32.totalorder %s81_s14, %s81_s14 }
  0x50   :  { %p1671_p7 = scmp.ne.s32.totalorder %s81_s14, %s1670_s3  ;;  %p1676_p9 = scmp.lt.s32.totalorder %s1670_s3, %s1670_s3 }
  0x52   :  { %p1677_p10 = por %p1676_p9, %p1675_p8 }
  0x54   :  { %p1678_p11 = pnand %p1677_p10, %p1671_p7 }
  0x56   :  { %1681 = shalt.err (!%p1678_p11)
}
  0x57   :  { %86 = dma.hbm_to_vmem [thread:$0]  %s1979_s7, 1024, %s81_s14, [#allocation9], %s1741_s18, %s1741_s18, %s1742_s24  }
  0x58   :  { %s1682_s28 = scalar_lea.hbm %s1981_s9, 1024 }
  0x59   :  { %p1683_p12 = scmp.ne.s32.totalorder %s1981_s9, %s1682_s28  ;;  %p1686_p13 = scmp.lt.u32.totalorder %s1682_s28, %s1981_s9 }
  0x5b   :  { %p1688_p0 = pnand %p1686_p13, %p1683_p12 }
  0x5d   :  { %1691 = shalt.err (!%p1688_p0)
}
  0x5e   :  { %s1692_s5 = scalar_lea.vmem %s1869_s17, 1024  ;;  %p1697_p2 = scmp.lt.s32.totalorder %s1869_s17, %s1869_s17 }
  0x5f   :  { %p1693_p1 = scmp.ne.s32.totalorder %s1869_s17, %s1692_s5  ;;  %p1698_p3 = scmp.lt.s32.totalorder %s1692_s5, %s1692_s5 }
  0x61   :  { %p1699_p4 = por %p1698_p3, %p1697_p2 }
  0x63   :  { %p1700_p5 = pnand %p1699_p4, %p1693_p1 }
  0x65   :  { %1703 = shalt.err (!%p1700_p5)
}
  0x66   :  { %100 = dma.hbm_to_vmem [thread:$0]  %s1981_s9, 1024, %s1869_s17, [#allocation12], %s1741_s18, %s1741_s18, %s1742_s24  }
  0x67   :  { %1726 = dma.done.wait [#allocation3], 128  }
  0x68   :  { %1727 = vsyncadd [#allocation3], 4294967168 }
  0x69   :  { %1728 = dma.done.wait [#allocation6], 9216  }
  0x6a   :  { %1729 = vsyncadd [#allocation6], 4294958080 }
  0x6b   :  { %1730 = dma.done.wait [#allocation9], 3072  }
  0x6c   :  { %1731 = vsyncadd [#allocation9], 4294964224 }
  0x6d   :  { %1732 = dma.done.wait [#allocation12], 1024  }
  0x6e   :  { %1733 = vsyncadd [#allocation12], 4294966272  ;;  %v1748_v0 = vmov 0   ;;  %v1431_v1 = vld [vmem:[#allocation5 + $0x4] ss:$16 sps:$4 sm:$0xff]   ;;  %v1437_v6 = vld [vmem:[#allocation2] sm:$0xff]   ;;  %v134_v54 = vlaneseq }
  0x6f   :  { %235 = vmatprep.mubr.bf16.mxu1 %v1748_v0  ;;  %v1433_v2 = vld [vmem:[#allocation5] ss:$16 sps:$4 sm:$0xff]   ;;  %203 = vmatprep.subr.bf16.mxu1 %v1431_v1  ;;  %v1434_v3 = vld [vmem:[#allocation5 + $0x24] ss:$16 sps:$4 sm:$0xff]   ;;  %v1440_v5 = vld [vmem:[#allocation5 + $0xc] ss:$16 sps:$4 sm:$0xff]  }
  0x70   :  { %204 = vmatpush1.bf16.msra.mxu1 %v1433_v2  ;;  %v1436_v4 = vld [vmem:[#allocation5 + $0x20] ss:$16 sps:$4 sm:$0xff]   ;;  %v1438_v7 = vld [vmem:[#allocation5 + $0x8] ss:$16 sps:$4 sm:$0xff]   ;;  %vm199_vm0 = vcmask 261120   ;;  %v1908_v55 = vshrl.u32 %v134_v54, 7 }
  0x71   :  { %205 = vmatprep.subr.bf16.mxu1 %v1434_v3  ;;  %v1444_v8 = vld [vmem:[#allocation7 + $0x4] ss:$8 sps:$4 sm:$0xff]   ;;  %v1446_v9 = vld [vmem:[#allocation7] ss:$8 sps:$4 sm:$0xff]   ;;  %v1447_v11 = vld [vmem:[#allocation7 + $0x14] ss:$8 sps:$4 sm:$0xff]  }
  0x72   :  { %v1443_v10 = vld [vmem:[#allocation5 + $0x2c] ss:$16 sps:$4 sm:$0xff]   ;;  %697 = vmatprep.subr.bf16.mxu0 %v1444_v8  ;;  %v1449_v12 = vld [vmem:[#allocation7 + $0x10] ss:$8 sps:$4 sm:$0xff]   ;;  %v1452_v15 = vld [vmem:[#allocation7 + $0x20] ss:$8 sps:$4 sm:$0xff]  }
  0x73   :  { %698 = vmatpush1.bf16.msra.mxu0 %v1446_v9  ;;  %v1441_v13 = vld [vmem:[#allocation5 + $0x28] ss:$16 sps:$4 sm:$0xff]   ;;  %v1450_v14 = vld [vmem:[#allocation7 + $0x24] ss:$8 sps:$4 sm:$0xff]   ;;  %v1453_v16 = vld [vmem:[#allocation7 + $0x34] ss:$8 sps:$4 sm:$0xff]  }
  0x74   :  { %206 = vmatpush1.bf16.msra.mxu1 %v1436_v4  ;;  %699 = vmatprep.subr.bf16.mxu0 %v1447_v11  ;;  %v1455_v17 = vld [vmem:[#allocation7 + $0x30] ss:$8 sps:$4 sm:$0xff]   ;;  %v1456_v18 = vld [vmem:[#allocation7 + $0x44] ss:$8 sps:$4 sm:$0xff]   ;;  %v1458_v19 = vld [vmem:[#allocation7 + $0x40] ss:$8 sps:$4 sm:$0xff]  }
  0x75   :  { %246 = vmatprep.subr.bf16.mxu1 %v1440_v5  ;;  %v1459_v20 = vld [vmem:[#allocation7 + $0x54] ss:$8 sps:$4 sm:$0xff]   ;;  %v1461_v21 = vld [vmem:[#allocation7 + $0x50] ss:$8 sps:$4 sm:$0xff]   ;;  %v1462_v22 = vld [vmem:[#allocation7 + $0x64] ss:$8 sps:$4 sm:$0xff]  }
  0x76   :  { %v1464_v23 = vld [vmem:[#allocation7 + $0x60] ss:$8 sps:$4 sm:$0xff]   ;;  %v1465_v24 = vld [vmem:[#allocation7 + $0x74] ss:$8 sps:$4 sm:$0xff]   ;;  %v1467_v25 = vld [vmem:[#allocation7 + $0x70] ss:$8 sps:$4 sm:$0xff]  }
  0x77   :  { %1226 = vmatmul.mubr.msk.bf16.vlgmr.msra.gmra.mrb[0].mxu1 %vm199_vm0, %v1437_v6  ;;  %700 = vmatpush1.bf16.msra.mxu0 %v1449_v12  ;;  %v1468_v26 = vld [vmem:[#allocation7 + $0x84] ss:$8 sps:$4 sm:$0xff]   ;;  %v1470_v27 = vld [vmem:[#allocation7 + $0x80] ss:$8 sps:$4 sm:$0xff]   ;;  %v1471_v28 = vld [vmem:[#allocation7 + $0x94] ss:$8 sps:$4 sm:$0xff]  }
  0x78   :  { %247 = vmatpush1.bf16.msra.mxu1 %v1438_v7  ;;  %278 = vmatprep.mubr.bf16.mxu1 %v1748_v0  ;;  %v1473_v29 = vld [vmem:[#allocation7 + $0x90] ss:$8 sps:$4 sm:$0xff]   ;;  %v1474_v30 = vld [vmem:[#allocation7 + $0xa4] ss:$8 sps:$4 sm:$0xff]   ;;  %v1476_v31 = vld [vmem:[#allocation7 + $0xa0] ss:$8 sps:$4 sm:$0xff]  }
  0x79   :  { %248 = vmatprep.subr.bf16.mxu1 %v1443_v10  ;;  %701 = vmatprep.subr.bf16.mxu0 %v1450_v14  ;;  %v1477_v32 = vld [vmem:[#allocation7 + $0xb4] ss:$8 sps:$4 sm:$0xff]   ;;  %v1479_v33 = vld [vmem:[#allocation7 + $0xb0] ss:$8 sps:$4 sm:$0xff]   ;;  %v1480_v34 = vld [vmem:[#allocation7 + $0xc4] ss:$8 sps:$4 sm:$0xff]  }
  0x7a   :  { %v1482_v35 = vld [vmem:[#allocation7 + $0xc0] ss:$8 sps:$4 sm:$0xff]   ;;  %v1483_v36 = vld [vmem:[#allocation7 + $0xd4] ss:$8 sps:$4 sm:$0xff]   ;;  %v1485_v37 = vld [vmem:[#allocation7 + $0xd0] ss:$8 sps:$4 sm:$0xff]  }
  0x7b   :  { %702 = vmatpush1.bf16.msra.mxu0 %v1452_v15  ;;  %v1486_v38 = vld [vmem:[#allocation7 + $0xe4] ss:$8 sps:$4 sm:$0xff]   ;;  %v1488_v39 = vld [vmem:[#allocation7 + $0xe0] ss:$8 sps:$4 sm:$0xff]   ;;  %v1489_v40 = vld [vmem:[#allocation7 + $0xf4] ss:$8 sps:$4 sm:$0xff]  }
  0x7c   :  { %249 = vmatpush1.bf16.msra.mxu1 %v1441_v13  ;;  %703 = vmatprep.subr.bf16.mxu0 %v1453_v16  ;;  %v1491_v41 = vld [vmem:[#allocation7 + $0xf0] ss:$8 sps:$4 sm:$0xff]   ;;  %v1494_v42 = vld [vmem:[#allocation7 + $0x104] ss:$8 sps:$4 sm:$0xff]   ;;  %v136_v56 = vsub.s32 0, %v1908_v55  ;;  %v140_v58 = vsub.s32 1, %v1908_v55 }
  0x7d   :  { %v1540_v43 = vld [vmem:[#allocation8 + $0x40] sm:$0xff]   ;;  %v1542_v45 = vld [vmem:[#allocation8 + $0x48] sm:$0xff]   ;;  %v1544_v47 = vld [vmem:[#allocation8 + $0x50] sm:$0xff]   ;;  %v144_v0 = vsub.s32 2, %v1908_v55  ;;  %v148_v3 = vsub.s32 3, %v1908_v55  ;;  %vm1750_vm1 = vmmov 0  }
  0x7e   :  { %v1541_v44 = vld [vmem:[#allocation8] sm:$0xff]   ;;  %1327 = vmatprep.subr.bf16.mxu1 %v1540_v43  ;;  %v1543_v46 = vld [vmem:[#allocation8 + $0x8] sm:$0xff]   ;;  %v1545_v48 = vld [vmem:[#allocation8 + $0x10] sm:$0xff]   ;;  %s1751_s22 = smov [#allocation13]  }
  0x7f   :  { %1227 = vmatmul.mubr.msk.bf16.vlgmr.msra.gmra.mrb[4].mxu1 %vm199_vm0, %v1437_v6  ;;  %704 = vmatpush1.bf16.msra.mxu0 %v1455_v17  ;;  %v1546_v49 = vld [vmem:[#allocation8 + $0x58] sm:$0xff]   ;;  %v1548_v51 = vld [vmem:[#allocation8 + $0x60] sm:$0xff]   ;;  %v1550_v53 = vld [vmem:[#allocation8 + $0x68] sm:$0xff]   ;;  %s1202_s23 = sshll.u32 %s1751_s22, 4  ;;  %s1203_s23 = int_to_ptr.vmem [resolvable:$true] %s1202_s23 }
  0x80   :  { %705 = vmatprep.subr.bf16.mxu0 %v1456_v18  ;;  %1328 = vmatpush3.bf16.msra.mxu1 %v1541_v44  ;;  %v1547_v50 = vld [vmem:[#allocation8 + $0x18] sm:$0xff]   ;;  %v1549_v52 = vld [vmem:[#allocation8 + $0x20] sm:$0xff]   ;;  %v1557_v55 = vld [vmem:[#allocation10 + $0x8] sm:$0xff]   ;;  %p1709_p7 = scmp.lt.s32.totalorder %s1203_s23, %s1203_s23 }
  0x81   :  { %1329 = vmatprep.subr.bf16.mxu1 %v1542_v45  ;;  %v132_v57 = vld [vmem:[%s1974_s2] sm:$0xf]  ;;  %v1492_v15 = vld [vmem:[#allocation7 + $0x100] ss:$8 sps:$4 sm:$0xff]   ;;  %v1497_v17 = vld [vmem:[#allocation7 + $0x114] ss:$8 sps:$4 sm:$0xff]  }
  0x82   :  { %v137_v59 = vrot.slane %v132_v57, %v136_v56  ;;  %v141_v60 = vrot.slane %v132_v57, %v140_v58  ;;  %v145_v9 = vrot.slane %v132_v57, %v144_v0  ;;  %v149_v12 = vrot.slane %v132_v57, %v148_v3  ;;  %v1513_v43 = vld [vmem:[#allocation7 + $0x170] ss:$8 sps:$4 sm:$0xff]   ;;  %v1518_v44 = vld [vmem:[#allocation7 + $0x184] ss:$8 sps:$4 sm:$0xff]   ;;  %v1516_v45 = vld [vmem:[#allocation7 + $0x180] ss:$8 sps:$4 sm:$0xff]  }
  0x83   :  { %706 = vmatpush1.bf16.msra.mxu0 %v1458_v19  ;;  %v1533_v54 = vld [vmem:[#allocation7 + $0x1d4] ss:$8 sps:$4 sm:$0xff]   ;;  %v1531_v57 = vld [vmem:[#allocation7 + $0x1d0] ss:$8 sps:$4 sm:$0xff]  }
  0x84   :  { %707 = vmatprep.subr.bf16.mxu0 %v1459_v20  ;;  %1330 = vmatpush3.bf16.msra.mxu1 %v1543_v46  ;;  %v1521_v46 = vld [vmem:[#allocation7 + $0x194] ss:$8 sps:$4 sm:$0xff]  }
  0x85   :  { %1331 = vmatprep.subr.bf16.mxu1 %v1544_v47  ;;  %v1519_v47 = vld [vmem:[#allocation7 + $0x190] ss:$8 sps:$4 sm:$0xff]  }
  0x86   :  { %v1552_v0 = vld [vmem:[#allocation8 + $0x70] sm:$0xff]   ;;  %v1555_v3 = vld [vmem:[#allocation8 + $0x38] sm:$0xff]  }
  0x87   :  { %708 = vmatpush1.bf16.msra.mxu0 %v1461_v21 }
  0x88   :  { %709 = vmatprep.subr.bf16.mxu0 %v1462_v22  ;;  %1332 = vmatpush3.bf16.msra.mxu1 %v1545_v48  ;;  %v1524_v48 = vld [vmem:[#allocation7 + $0x1a4] ss:$8 sps:$4 sm:$0xff]  }
  0x89   :  { %1333 = vmatprep.subr.bf16.mxu1 %v1546_v49  ;;  %v1522_v49 = vld [vmem:[#allocation7 + $0x1a0] ss:$8 sps:$4 sm:$0xff]  }
  0x8b   :  { %710 = vmatpush1.bf16.msra.mxu0 %v1464_v23 }
  0x8c   :  { %711 = vmatprep.subr.bf16.mxu0 %v1465_v24  ;;  %1334 = vmatpush3.bf16.msra.mxu1 %v1547_v50  ;;  %v1527_v50 = vld [vmem:[#allocation7 + $0x1b4] ss:$8 sps:$4 sm:$0xff]  }
  0x8d   :  { %1335 = vmatprep.subr.bf16.mxu1 %v1548_v51  ;;  %v1525_v51 = vld [vmem:[#allocation7 + $0x1b0] ss:$8 sps:$4 sm:$0xff]  }
  0x8f   :  { %712 = vmatpush1.bf16.msra.mxu0 %v1467_v25  ;;  %v1495_v25 = vld [vmem:[#allocation7 + $0x110] ss:$8 sps:$4 sm:$0xff]  }
  0x90   :  { %713 = vmatprep.subr.bf16.mxu0 %v1468_v26  ;;  %1336 = vmatpush3.bf16.msra.mxu1 %v1549_v52  ;;  %v1530_v52 = vld [vmem:[#allocation7 + $0x1c4] ss:$8 sps:$4 sm:$0xff]  }
  0x91   :  { %1337 = vmatprep.subr.bf16.mxu1 %v1550_v53  ;;  %v1528_v53 = vld [vmem:[#allocation7 + $0x1c0] ss:$8 sps:$4 sm:$0xff]  }
  0x93   :  { %714 = vmatpush1.bf16.msra.mxu0 %v1470_v27 }
  0x94   :  { %715 = vmatprep.subr.bf16.mxu0 %v1471_v28  ;;  %v1500_v28 = vld [vmem:[#allocation7 + $0x124] ss:$8 sps:$4 sm:$0xff]  }
  0x97   :  { %716 = vmatpush1.bf16.msra.mxu0 %v1473_v29 }
  0x98   :  { %717 = vmatprep.subr.bf16.mxu0 %v1474_v30 }
  0x9b   :  { %718 = vmatpush1.bf16.msra.mxu0 %v1476_v31 }
  0x9c   :  { %719 = vmatprep.subr.bf16.mxu0 %v1477_v32  ;;  %v1498_v32 = vld [vmem:[#allocation7 + $0x120] ss:$8 sps:$4 sm:$0xff]  }
  0x9f   :  { %720 = vmatpush1.bf16.msra.mxu0 %v1479_v33 }
  0xa0   :  { %721 = vmatprep.subr.bf16.mxu0 %v1480_v34  ;;  %v1503_v34 = vld [vmem:[#allocation7 + $0x134] ss:$8 sps:$4 sm:$0xff]  }
  0xa3   :  { %722 = vmatpush1.bf16.msra.mxu0 %v1482_v35  ;;  %v1501_v35 = vld [vmem:[#allocation7 + $0x130] ss:$8 sps:$4 sm:$0xff]  }
  0xa4   :  { %723 = vmatprep.subr.bf16.mxu0 %v1483_v36  ;;  %v1506_v36 = vld [vmem:[#allocation7 + $0x144] ss:$8 sps:$4 sm:$0xff]  }
  0xa7   :  { %724 = vmatpush1.bf16.msra.mxu0 %v1485_v37  ;;  %v1504_v37 = vld [vmem:[#allocation7 + $0x140] ss:$8 sps:$4 sm:$0xff]  }
  0xa8   :  { %725 = vmatprep.subr.bf16.mxu0 %v1486_v38  ;;  %v1509_v38 = vld [vmem:[#allocation7 + $0x154] ss:$8 sps:$4 sm:$0xff]  }
  0xab   :  { %726 = vmatpush1.bf16.msra.mxu0 %v1488_v39  ;;  %v1507_v39 = vld [vmem:[#allocation7 + $0x150] ss:$8 sps:$4 sm:$0xff]  }
  0xac   :  { %727 = vmatprep.subr.bf16.mxu0 %v1489_v40  ;;  %v1512_v40 = vld [vmem:[#allocation7 + $0x164] ss:$8 sps:$4 sm:$0xff]  }
  0xaf   :  { %728 = vmatpush1.bf16.msra.mxu0 %v1491_v41  ;;  %v1510_v41 = vld [vmem:[#allocation7 + $0x160] ss:$8 sps:$4 sm:$0xff]  }
  0xb0   :  { %740 = vmatprep.subr.bf16.mxu0 %v1494_v42  ;;  %v1515_v42 = vld [vmem:[#allocation7 + $0x174] ss:$8 sps:$4 sm:$0xff]  }
 0x14a   :  { %v237_v61 = vpop.f32.mrb[0].mxu1 }
 0x14b   :  { %v238_v62 = vadd.f32 %v237_v61, %v137_v59  ;;  %v239_v63 = vpop.f32.mrb[1].mxu1  ;;  %v1539_v61 = vld [vmem:[#allocation7 + $0x1f4] ss:$8 sps:$4 sm:$0xff]  }
 0x14c   :  { %v240_v1 = vadd.f32 %v239_v63, %v141_v60  ;;  %v241_v2 = vpop.f32.mrb[2].mxu1  ;;  %v1551_v63 = vld [vmem:[#allocation8 + $0x28] sm:$0xff]  }
 0x14d   :  { %v242_v4 = vadd.f32 %v241_v2, %v137_v59  ;;  %v243_v5 = vpop.f32.mrb[3].mxu1  ;;  %v289_v7 = vmax.f32 %v238_v62, 0.0  ;;  %v1536_v59 = vld [vmem:[#allocation7 + $0x1e4] ss:$8 sps:$4 sm:$0xff]   ;;  %v1537_v62 = vld [vmem:[#allocation7 + $0x1f0] ss:$8 sps:$4 sm:$0xff]   ;;  %1338 = vmatpush3.bf16.msra.mxu1 %v1551_v63 }
 0x14e   :  { %v244_v6 = vadd.f32 %v243_v5, %v141_v60  ;;  %v290_v10 = vmax.f32 %v240_v1, 0.0  ;;  %v1534_v60 = vld [vmem:[#allocation7 + $0x1e0] ss:$8 sps:$4 sm:$0xff]   ;;  %v1553_v1 = vld [vmem:[#allocation8 + $0x30] sm:$0xff]   ;;  %1339 = vmatprep.subr.bf16.mxu1 %v1552_v0  ;;  %v1554_v2 = vld [vmem:[#allocation8 + $0x78] sm:$0xff]  }
 0x14f   :  { %v293_v8 = vmax.f32 %v242_v4, 0.0  ;;  %v1749_v4 = vmov 0.0   ;;  %v365_v5 = vld [vmem:[%s1976_s4] sm:$0x3] }
 0x150   :  { %v294_v11 = vmax.f32 %v244_v6, 0.0  ;;  %v370_v6 = vrot.slane %v365_v5, %v136_v56  ;;  %v1558_v56 = vld [vmem:[#allocation10 + $0x10] sm:$0xff]  }
 0x151   :  { %v297_v13 = vpack.c.bf16 %v293_v8, %v289_v7  ;;  %1340 = vmatpush3.bf16.msra.mxu1 %v1553_v1  ;;  %v374_v7 = vrot.slane %v365_v5, %v140_v58  ;;  %v1559_v58 = vld [vmem:[#allocation10 + $0x18] sm:$0xff]  }
 0x152   :  { %v298_v14 = vpack.c.bf16 %v294_v11, %v290_v10  ;;  %v280_v16 = vpop.f32.mrb[4].mxu1  ;;  %1341 = vmatprep.subr.bf16.mxu1 %v1554_v2 }
 0x153   :  { %v281_v18 = vadd.f32 %v280_v16, %v145_v9  ;;  %v282_v19 = vpop.f32.mrb[5].mxu1 }
 0x154   :  { %729 = vmatprep.mubr.bf16.mxu0 %v298_v14  ;;  %v283_v20 = vadd.f32 %v282_v19, %v149_v12  ;;  %v284_v21 = vpop.f32.mrb[6].mxu1 }
 0x155   :  { %730 = vmatmul.mubr.bf16.vlgmr.msra.gmra.mrb[0].mxu0 %v297_v13  ;;  %v291_v22 = vmax.f32 %v281_v18, 0.0  ;;  %v285_v23 = vadd.f32 %v284_v21, %v145_v9  ;;  %v286_v24 = vpop.f32.mrb[7].mxu1  ;;  %1342 = vmatpush3.bf16.msra.mxu1 %v1555_v3 }
 0x156   :  { %741 = vmatpush1.bf16.msra.mxu0 %v1492_v15  ;;  %v292_v26 = vmax.f32 %v283_v20, 0.0  ;;  %v287_v27 = vadd.f32 %v286_v24, %v149_v12  ;;  %1367 = vmatprep.subr.bf16.mxu1 %v1749_v4  ;;  %v1561_v24 = vld [vmem:[#allocation10 + $0x28] sm:$0xff]  }
 0x157   :  { %742 = vmatprep.subr.bf16.mxu0 %v1497_v17  ;;  %v295_v29 = vmax.f32 %v285_v23, 0.0  ;;  %v1560_v23 = vld [vmem:[#allocation10 + $0x20] sm:$0xff]  }
 0x158   :  { %v296_v30 = vmax.f32 %v287_v27, 0.0 }
 0x159   :  { %v299_v31 = vpack.c.bf16 %v295_v29, %v291_v22  ;;  %v1556_v22 = vld [vmem:[#allocation10] sm:$0xff]  }
 0x15a   :  { %743 = vmatpush1.bf16.msra.mxu0 %v1495_v25  ;;  %v300_v33 = vpack.c.bf16 %v296_v30, %v292_v26  ;;  %v1562_v25 = vld [vmem:[#allocation10 + $0x30] sm:$0xff]   ;;  %v1563_v26 = vld [vmem:[#allocation10 + $0x38] sm:$0xff]  }
 0x15b   :  { %744 = vmatprep.subr.bf16.mxu0 %v1500_v28  ;;  %v1292_v28 = vld [vmem:[%s1978_s6] ss:$0 sm:$0xff] }
 0x15c   :  { %772 = vmatprep.mubr.bf16.mxu0 %v300_v33 }
 0x15e   :  { %745 = vmatpush1.bf16.msra.mxu0 %v1498_v32 }
 0x15f   :  { %746 = vmatprep.subr.bf16.mxu0 %v1503_v34 }
 0x162   :  { %747 = vmatpush1.bf16.msra.mxu0 %v1501_v35 }
 0x163   :  { %748 = vmatprep.subr.bf16.mxu0 %v1506_v36 }
 0x166   :  { %749 = vmatpush1.bf16.msra.mxu0 %v1504_v37 }
 0x167   :  { %750 = vmatprep.subr.bf16.mxu0 %v1509_v38  ;;  %v1564_v38 = vld [vmem:[#allocation11] sm:$0xff]  }
 0x16a   :  { %751 = vmatpush1.bf16.msra.mxu0 %v1507_v39 }
 0x16b   :  { %752 = vmatprep.subr.bf16.mxu0 %v1512_v40  ;;  %v1565_v40 = vld [vmem:[#allocation11 + $0x8] sm:$0xff]  }
 0x16e   :  { %753 = vmatpush1.bf16.msra.mxu0 %v1510_v41  ;;  %v1566_v41 = vld [vmem:[#allocation11 + $0x10] sm:$0xff]  }
 0x16f   :  { %754 = vmatprep.subr.bf16.mxu0 %v1515_v42  ;;  %v1567_v42 = vld [vmem:[#allocation11 + $0x18] sm:$0xff]  }
 0x172   :  { %755 = vmatpush1.bf16.msra.mxu0 %v1513_v43  ;;  %v1568_v43 = vld [vmem:[#allocation11 + $0x20] sm:$0xff]  }
 0x173   :  { %756 = vmatprep.subr.bf16.mxu0 %v1518_v44  ;;  %v1569_v44 = vld [vmem:[#allocation11 + $0x28] sm:$0xff]  }
 0x176   :  { %757 = vmatpush1.bf16.msra.mxu0 %v1516_v45  ;;  %v1570_v45 = vld [vmem:[#allocation11 + $0x30] sm:$0xff]  }
 0x177   :  { %758 = vmatprep.subr.bf16.mxu0 %v1521_v46  ;;  %v1571_v46 = vld [vmem:[#allocation11 + $0x38] sm:$0xff]  }
 0x17a   :  { %759 = vmatpush1.bf16.msra.mxu0 %v1519_v47  ;;  %v1309_v47 = vld [vmem:[%s1980_s8] ss:$0 sm:$0xff]  ;;  %s1704_s8 = scalar_lea.vmem %s1203_s23, 256 }
 0x17b   :  { %760 = vmatprep.subr.bf16.mxu0 %v1524_v48  ;;  %p1705_p6 = scmp.ne.s32.totalorder %s1203_s23, %s1704_s8  ;;  %p1710_p8 = scmp.lt.s32.totalorder %s1704_s8, %s1704_s8 }
 0x17d   :  { %p1711_p9 = por %p1710_p8, %p1709_p7 }
 0x17e   :  { %761 = vmatpush1.bf16.msra.mxu0 %v1522_v49 }
 0x17f   :  { %762 = vmatprep.subr.bf16.mxu0 %v1527_v50  ;;  %p1712_p10 = pnand %p1711_p9, %p1705_p6 }
 0x182   :  { %763 = vmatpush1.bf16.msra.mxu0 %v1525_v51 }
 0x183   :  { %764 = vmatprep.subr.bf16.mxu0 %v1530_v52 }
 0x186   :  { %765 = vmatpush1.bf16.msra.mxu0 %v1528_v53 }
 0x187   :  { %766 = vmatprep.subr.bf16.mxu0 %v1533_v54 }
 0x18a   :  { %767 = vmatpush1.bf16.msra.mxu0 %v1531_v57 }
 0x18b   :  { %768 = vmatprep.subr.bf16.mxu0 %v1536_v59 }
 0x18e   :  { %769 = vmatpush1.bf16.msra.mxu0 %v1534_v60  ;;  %v1318_v60 = vld [vmem:[%s1982_s10] ss:$0 sm:$0xff] }
 0x18f   :  { %770 = vmatprep.subr.bf16.mxu0 %v1539_v61 }
 0x192   :  { %771 = vmatpush1.bf16.msra.mxu0 %v1537_v62 }
 0x195   :  { %773 = vmatmul.mubr.bf16.vlgmr.msra.gmra.mrb[0].mxu0 %v299_v31 }
 0x268   :  { %v774_v8 = vpop.f32.mrb[0].mxu0 }
 0x269   :  { %v1407_v9 = vadd.f32 %v774_v8, %v370_v6  ;;  %v776_v10 = vpop.f32.mrb[1].mxu0 }
 0x26a   :  { %v1408_v11 = vadd.f32 %v776_v10, %v374_v7  ;;  %v778_v12 = vpop.f32.mrb[2].mxu0 }
 0x26b   :  { %v1409_v13 = vadd.f32 %v778_v12, %v370_v6  ;;  %v780_v14 = vpop.f32.mrb[3].mxu0  ;;  %v783_v16 = vmax.f32 %v1407_v9, 0.0 }
 0x26c   :  { %v1410_v15 = vadd.f32 %v780_v14, %v374_v7  ;;  %v784_v18 = vmax.f32 %v1408_v11, 0.0 }
 0x26d   :  { %v785_v17 = vmax.f32 %v1409_v13, 0.0 }
 0x26e   :  { %v786_v19 = vmax.f32 %v1410_v15, 0.0 }
 0x26f   :  { %v787_v20 = vpack.c.bf16 %v785_v17, %v783_v16 }
 0x270   :  { %v788_v21 = vpack.c.bf16 %v786_v19, %v784_v18 }
 0x272   :  { %956 = vmatprep.mubr.bf16.mxu1 %v788_v21 }
 0x273   :  { %957 = vmatmul.mubr.bf16.vlgmr.msra.gmra.mrb[8].mxu1 %v787_v20 }
 0x274   :  { %1368 = vmatpush3.bf16.msra.mxu1 %v1556_v22  ;;  %1383 = vmatprep.mubr.msk.bf16.mxu1 %vm1750_vm1, %v1749_v4 }
 0x275   :  { %1369 = vmatprep.subr.bf16.mxu1 %v1749_v4 }
 0x278   :  { %1370 = vmatpush3.bf16.msra.mxu1 %v1557_v55 }
 0x279   :  { %1371 = vmatprep.subr.bf16.mxu1 %v1749_v4 }
 0x27c   :  { %1372 = vmatpush3.bf16.msra.mxu1 %v1558_v56 }
 0x27d   :  { %1373 = vmatprep.subr.bf16.mxu1 %v1749_v4 }
 0x280   :  { %1374 = vmatpush3.bf16.msra.mxu1 %v1559_v58 }
 0x281   :  { %1375 = vmatprep.subr.bf16.mxu1 %v1749_v4 }
 0x284   :  { %1376 = vmatpush3.bf16.msra.mxu1 %v1560_v23 }
 0x285   :  { %1377 = vmatprep.subr.bf16.mxu1 %v1749_v4 }
 0x288   :  { %1378 = vmatpush3.bf16.msra.mxu1 %v1561_v24 }
 0x289   :  { %1379 = vmatprep.subr.bf16.mxu1 %v1749_v4 }
 0x28c   :  { %1380 = vmatpush3.bf16.msra.mxu1 %v1562_v25 }
 0x28d   :  { %1381 = vmatprep.subr.bf16.mxu1 %v1749_v4 }
 0x290   :  { %1382 = vmatpush3.bf16.msra.mxu1 %v1563_v26 }
 0x291   :  { %1387 = vmatprep.subr.bf16.mxu1 %v1749_v4 }
 0x346   :  { %v1343_v27 = vpop.f32.mrb[8].mxu1 }
 0x347   :  { %v1344_v29 = vpop.f32.mrb[9].mxu1 }
 0x348   :  { %v1345_v30 = vadd.f32 %v1344_v29, %v1343_v27  ;;  %v1346_v31 = vpop.f32.mrb[10].mxu1 }
 0x349   :  { %v1347_v32 = vpop.f32.mrb[11].mxu1 }
 0x34a   :  { %v959_v33 = vadd.f32 %v1345_v30, %v1292_v28  ;;  %v1348_v34 = vadd.f32 %v1347_v32, %v1346_v31 }
 0x34c   :  { %v962_v35 = vadd.f32 %v1348_v34, %v1292_v28  ;;  %v965_v36 = vmax.f32 %v959_v33, 0.0 }
 0x34e   :  { %v966_v37 = vmax.f32 %v962_v35, 0.0 }
 0x350   :  { %v967_v39 = vpack.c.bf16 %v966_v37, %v965_v36 }
 0x352   :  { %1384 = vmatmul.mubr.bf16.vlgmr.msra.gmra.mrb[12].mxu1 %v967_v39 }
 0x353   :  { %1388 = vmatpush3.bf16.msra.mxu1 %v1564_v38  ;;  %1403 = vmatprep.mubr.msk.bf16.mxu1 %vm1750_vm1, %v1749_v4 }
 0x354   :  { %1389 = vmatprep.subr.bf16.mxu1 %v1749_v4 }
 0x357   :  { %1390 = vmatpush3.bf16.msra.mxu1 %v1565_v40 }
 0x358   :  { %1391 = vmatprep.subr.bf16.mxu1 %v1749_v4 }
 0x35b   :  { %1392 = vmatpush3.bf16.msra.mxu1 %v1566_v41 }
 0x35c   :  { %1393 = vmatprep.subr.bf16.mxu1 %v1749_v4 }
 0x35f   :  { %1394 = vmatpush3.bf16.msra.mxu1 %v1567_v42 }
 0x360   :  { %1395 = vmatprep.subr.bf16.mxu1 %v1749_v4 }
 0x363   :  { %1396 = vmatpush3.bf16.msra.mxu1 %v1568_v43 }
 0x364   :  { %1397 = vmatprep.subr.bf16.mxu1 %v1749_v4 }
 0x367   :  { %1398 = vmatpush3.bf16.msra.mxu1 %v1569_v44 }
 0x368   :  { %1399 = vmatprep.subr.bf16.mxu1 %v1749_v4 }
 0x36b   :  { %1400 = vmatpush3.bf16.msra.mxu1 %v1570_v45 }
 0x36c   :  { %1401 = vmatprep.subr.bf16.mxu1 %v1749_v4 }
 0x36f   :  { %1402 = vmatpush3.bf16.msra.mxu1 %v1571_v46 }
 0x425   :  { %v1073_v48 = vpop.f32.mrb[12].mxu1 }
 0x426   :  { %v1074_v49 = vadd.f32 %v1309_v47, %v1073_v48  ;;  %v1385_v50 = vpop.f32.mrb[13].mxu1 }
 0x427   :  { %v1076_v51 = vpop.f32.mrb[14].mxu1 }
 0x428   :  { %v1077_v52 = vadd.f32 %v1309_v47, %v1076_v51  ;;  %v1386_v53 = vpop.f32.mrb[15].mxu1  ;;  %v1080_v54 = vmax.f32 %v1074_v49, 0.0 }
 0x42a   :  { %v1081_v57 = vmax.f32 %v1077_v52, 0.0 }
 0x42c   :  { %v1082_v59 = vpack.c.bf16 %v1081_v57, %v1080_v54 }
 0x42e   :  { %1404 = vmatmul.mubr.bf16.vlgmr.msra.gmra.mrb[16].mxu1 %v1082_v59 }
 0x501   :  { %v1188_v61 = vpop.f32.mrb[16].mxu1 }
 0x502   :  { %v1189_v62 = vadd.f32 %v1318_v60, %v1188_v61  ;;  %v1405_v63 = vpop.f32.mrb[17].mxu1 }
 0x503   :  { %v1191_v0 = vpop.f32.mrb[18].mxu1 }
 0x504   :  { %1195 = vst [vmem:[#allocation13] sm:$0xff] %v1189_v62  ;;  %v1192_v1 = vadd.f32 %v1318_v60, %v1191_v0  ;;  %v1406_v2 = vpop.f32.mrb[19].mxu1 }
 0x506   :  { %1196 = vst [vmem:[#allocation13 + $0x8] sm:$0xff] %v1192_v1 }
 0x507   :  { %1715 = shalt.err (!%p1712_p10)
}
 0x508   :  { %s1716_s3 = scalar_lea.hbm %s1983_s11, 256 }
 0x509   :  { %p1717_p11 = scmp.ne.s32.totalorder %s1983_s11, %s1716_s3  ;;  %p1720_p12 = scmp.lt.u32.totalorder %s1716_s3, %s1983_s11 }
 0x50b   :  { %p1722_p13 = pnand %p1720_p12, %p1717_p11 }
 0x50d   :  { %1725 = shalt.err (!%p1722_p13)
}
 0x50e   :  { %1208 = dma.vmem_to_hbm [thread:$0]  %s1203_s23, 256, %s1983_s11, [#allocation4], %s1744_s0, %s1744_s0, %s1745_s15  }
 0x50f   :  { %1734 = dma.done.wait [#allocation4], 256  }
 0x510   :  { %1735 = vsyncadd [#allocation4], 4294967040 }
 0x511   :  { %1212 = vsyncpa [#allocation3], 1 }
 0x512   :  { %1213 = vsyncpa [#allocation6], 1 }
 0x513   :  { %1214 = vsyncpa [#allocation9], 1 }
 0x514   :  { %1215 = vsyncpa [#allocation12], 1 }
 0x515   :  { %1216 = vsyncpa [#allocation4], 1 }

</bundles_post_ra>
